<compile_context>
chip_gen: v5e
topology: v5e:2x2
jax: 0.10.0
libtpu: 0.0.40
codegen_flags: <defaults>
</compile_context>

<pallas_src>
import functools

import numpy as np
import jax
import jax.numpy as jnp
from jax.experimental import pallas as pl
from jax.experimental.pallas import tpu as pltpu


# ----------------------------------------------------------------------------
# Host-side operator construction (float64 composition, cast once at the end)
# ----------------------------------------------------------------------------
def _dct_matrix(S: int) -> np.ndarray:
    """Orthonormal DCT-II matrix == scipy.fftpack.dct(np.eye(S), norm='ortho', axis=0)."""
    k = np.arange(S)[:, None].astype(np.float64)
    n = np.arange(S)[None, :].astype(np.float64)
    D = np.cos(np.pi * k * (2.0 * n + 1.0) / (2.0 * S)) * np.sqrt(2.0 / S)
    D[0, :] *= 1.0 / np.sqrt(2.0)
    return D


def _conv_matrix(h2d: np.ndarray, S: int) -> np.ndarray:
    """Matrix Hm with vec(conv(h, x)) = Hm @ vec(x) (row-major vec), reproducing the
    torch `conv()` semantics exactly: pad x so the flipped-kernel conv output is
    512x512, then center-crop back to SxS.  (Hard-codes the 512 constant from the
    reference and assumes psf size == image size, as asserted by the wrapper.)"""
    padding = 512 - (S - S + 1)            # torch: final_conv_dim - (x_dim - h_dim + 1)
    P = padding // 2                       # left / top pad applied by F.pad
    starti = (512 - S) // 2                # crop start in the 512-sized output
    off = starti + (S - 1) - P             # effective full-convolution offset
    idx = np.arange(S)
    d = idx[:, None] + off - idx[None, :]  # d[i, p] = i + off - p
    valid = (d >= 0) & (d < S)
    dc = np.clip(d, 0, S - 1)
    # Hm[(i, j), (p, q)] = h[i + off - p, j + off - q]  (0 outside support)
    Hm = h2d[dc[:, None, :, None], dc[None, :, None, :]]
    mask = valid[:, None, :, None] & valid[None, :, None, :]
    return np.where(mask, Hm, 0.0).reshape(S * S, S * S)


# ----------------------------------------------------------------------------
# Small hardware-aware helpers
# ----------------------------------------------------------------------------
def _vmem_capacity_bytes() -> int:
    try:
        return int(pltpu.get_tpu_info().vmem_capacity_bytes)
    except Exception:
        return 64 << 20          # conservative: v7x per-TensorCore VMEM


def _tb_cap() -> int:
    """Max batch tile: v5e's 4x128^2 MXU gains nothing beyond 128; v6e/v7x (256^2) can use 256."""
    try:
        kind = jax.devices()[0].device_kind.lower()
    except Exception:
        return 128
    if ("v5 lite" in kind) or ("v5e" in kind) or ("v5litepod" in kind):
        return 128
    return 256


def _pick_batch_tile(bc: int, tb_cap: int) -> int:
    """Sublane-aligned batch tile: (a) keep >=2 grid steps when the batch allows so v7x's
    second TensorCore gets work, (b) minimize padded rows, (c) then prefer bigger tiles."""
    cands = [t for t in (8, 16, 32, 64, 128, 256) if t <= tb_cap]
    want_multi = bc > 8

    def score(tb):
        steps = -(-bc // tb)
        pad = steps * tb - bc
        return (1 if (want_multi and steps < 2) else 0, pad, steps)

    return min(cands, key=score)


# ----------------------------------------------------------------------------
# Pallas kernel: all `num_layers` LetNet layers in one invocation
# ----------------------------------------------------------------------------
def letnet_kernel(c_ref, tau_ref, y_ref, x0_ref, w_ref, gw_ref, g_ref, yop_ref,
                  out_ref, ycst_ref, *, num_layers, num_dog, mm_dtype):
    tau = tau_ref[0]                              # SMEM scalar
    neg_inv_two_tau2 = -1.0 / (2.0 * tau * tau)   # scalar; avoids per-element divide

    def rho(u):
        # rho(u) = sum_k c[k-1] * u * exp(-(k-1) u^2 / (2 tau^2));  one EUP exp per call.
        r = c_ref[0] * u                          # k = 1 term: exp(0) == 1
        if num_dog > 1:
            env = jnp.exp(u * u * neg_inv_two_tau2)
            term = u
            for k in range(2, num_dog + 1):
                term = term * env                 # u * env^(k-1)
                r = r + c_ref[k - 1] * term
        return r

    # Shared affine term  lr * D conv(h_flip, y) D^T  (vec form) in an explicit f32 scratch.
    ycst_ref[...] = jnp.dot(y_ref[...].astype(mm_dtype), yop_ref[...],
                            preferred_element_type=jnp.float32)

    # Layer 1:  u = D (x0 - lr*conv(h_flip, conv(h, x0) - y)) D^T  ==  x0 @ W + ycst.
    # Operators are read at their single point of use (no top-of-kernel hoists).
    u = jnp.dot(x0_ref[...].astype(mm_dtype), w_ref[...],
                preferred_element_type=jnp.float32) + ycst_ref[...]
    r = rho(u)

    # Layers 2..L: the previous layer's inverse DCT is fused into GW = G @ W.
    def layer_step(rr):
        uu = jnp.dot(rr.astype(mm_dtype), gw_ref[...],
                     preferred_element_type=jnp.float32) + ycst_ref[...]
        return rho(uu)

    n_rest = num_layers - 1
    if 0 < n_rest <= 8:                 # shallow nets: static unroll
        for _ in range(n_rest):
            r = layer_step(r)
    elif n_rest > 8:                    # deep nets: keep the per-layer body compact
        r = jax.lax.fori_loop(0, n_rest, lambda _, rr: layer_step(rr), r, unroll=2)

    # Final inverse DCT:  out = D^T r D   (vec form: r @ G).
    out_ref[...] = jnp.dot(r.astype(mm_dtype), g_ref[...],
                           preferred_element_type=jnp.float32).astype(out_ref.dtype)


# ----------------------------------------------------------------------------
# Wrapper
# ----------------------------------------------------------------------------
def letnet_forward(y, x0, psf, c, tau, num_layers, learning_rate,
                   matmul_dtype=jnp.bfloat16):
    N, C, H, W_ = y.shape
    assert C == 1 and H == W_, "LetNet conv uses a single channel, square images"
    S = H
    assert psf.shape == (1, 1, S, S), "D = gen_dct(psf.size(2)) requires psf size == image size"
    num_layers = int(num_layers)
    assert num_layers >= 1
    S2 = S * S
    S2P = -(-S2 // 128) * 128          # lane-dense: pad vec(image) axis to a multiple of 128
    BC = N * C
    lr = float(learning_rate)

    # --- fused operators (float64 composition on the host, cast once) ------------
    h2d = np.asarray(psf[0, 0], np.float64)
    D = _dct_matrix(S)
    G = np.kron(D, D)                                  # vec(D X D^T) = G @ vec(X), row-major vec
    Hm = _conv_matrix(h2d, S)                          # conv(h, .)
    Hfm = _conv_matrix(h2d[::-1, ::-1].copy(), S)      # conv(h.flip(2,3), .)
    GT = G.T
    Wop = (np.eye(S2) - lr * (Hm.T @ Hfm.T)) @ GT      # xt -> D(xt - lr*hf*(h*xt - 0))D^T part
    GWop = G @ Wop                                     # fuse previous layer's D^T(.)D
    Yop = lr * (Hfm.T @ GT)                            # y  -> lr * D conv(h_flip, y) D^T

    pad_op = S2P - S2

    def as_op(m):
        if pad_op:
            m = np.pad(m, ((0, pad_op), (0, pad_op)))  # zero rows/cols: padded lanes stay 0
        return jnp.asarray(m.astype(np.float32)).astype(matmul_dtype)

    Wop, GWop, Gop, Yop = as_op(Wop), as_op(GWop), as_op(G), as_op(Yop)

    # --- batch tiling: sublane-aligned, >=2 parallel steps when possible ----------
    TB = _pick_batch_tile(BC, _tb_cap())
    BP = -(-BC // TB) * TB
    grid = (BP // TB,)

    y_flat = jnp.asarray(y, jnp.float32).reshape(BC, S2)
    x0_flat = jnp.asarray(x0, jnp.float32).reshape(BC, S2)
    if (BP != BC) or pad_op:
        y_flat = jnp.pad(y_flat, ((0, BP - BC), (0, pad_op)))
        x0_flat = jnp.pad(x0_flat, ((0, BP - BC), (0, pad_op)))

    # --- VMEM budget / large-S gate -----------------------------------------------
    vmem_cap = _vmem_capacity_bytes()
    op_itemsize = int(np.dtype(matmul_dtype).itemsize)
    op_bytes = 4 * S2P * S2P * op_itemsize             # single-buffered resident operators
    tile_bytes = 9 * TB * S2P * 4                      # 2x-buffered y/x0/out tiles + scratch/live f32
    if op_bytes + tile_bytes > int(0.8 * vmem_cap):
        # TODO(synk): streamed large-S fallback (two-sided (S,S) DCT matmuls + K-tiled conv
        # contraction with an f32 VMEM accumulator) instead of dense S^2 x S^2 operators.
        raise NotImplementedError(
            f"dense-operator LetNet kernel needs ~{(op_bytes + tile_bytes) >> 20} MiB of VMEM "
            f"at S={S}, exceeding this chip's ~{vmem_cap >> 20} MiB VMEM")

    kernel = functools.partial(
        letnet_kernel,
        num_layers=num_layers,
        num_dog=int(np.asarray(c).size),
        mm_dtype=matmul_dtype,
    )

    smem = pl.BlockSpec(memory_space=pltpu.MemorySpace.SMEM)
    batch_spec = pl.BlockSpec((TB, S2P), lambda i: (i, 0))

    # pallas_call positional input order (the alias index below depends on it):
    #   0: c (SMEM), 1: tau (SMEM), 2: y_flat, 3: x0_flat, 4: Wop, 5: GWop, 6: Gop, 7: Yop
    X0_INPUT_INDEX = 3

    def build_and_run(single_buffer_ops: bool):
        if single_buffer_ops:
            # Constant index_map => fetched once; Buffered(1) drops the pointless second
            # pipeline buffer and halves the operators' VMEM footprint.
            op_spec = pl.BlockSpec((S2P, S2P), lambda i: (0, 0),
                                   pipeline_mode=pl.Buffered(1))
        else:
            op_spec = pl.BlockSpec((S2P, S2P), lambda i: (0, 0))
        vmem_est = (1 if single_buffer_ops else 2) * op_bytes + tile_bytes
        vmem_limit = None
        if vmem_est > (12 << 20):                      # beyond the smallest (v5e) default scope
            vmem_limit = min(int(vmem_est * 1.25), vmem_cap)   # ~25% headroom
        return pl.pallas_call(
            kernel,
            out_shape=jax.ShapeDtypeStruct((BP, S2P), jnp.float32),
            grid=grid,
            in_specs=[smem, smem, batch_spec, batch_spec,
                      op_spec, op_spec, op_spec, op_spec],
            out_specs=batch_spec,
            scratch_shapes=[pltpu.VMEM((TB, S2P), jnp.float32)],   # ycst scratch
            input_output_aliases={X0_INPUT_INDEX: 0},  # x0 is dead after layer 1
            compiler_params=pltpu.CompilerParams(
                dimension_semantics=("parallel",),
                vmem_limit_bytes=vmem_limit),
        )(
            jnp.asarray(c, jnp.float32).reshape(-1),          # c   -> SMEM (K,)
            jnp.asarray(tau, jnp.float32).reshape(1),         # tau -> SMEM (1,)
            y_flat, x0_flat, Wop, GWop, Gop, Yop,
        )

    try:
        out_flat = build_and_run(True)
        out_flat.block_until_ready()
    except Exception:   # jax build without Buffered(1) support on the grid pipeline
        out_flat = build_and_run(False)

    return out_flat[:BC, :S2].reshape(N, C, H, W_)


# ----------------------------------------------------------------------------
# Pure-JAX f32 reference of the original torch forward (for validation)
# ----------------------------------------------------------------------------
def _conv_torch(h, x):
    """jnp reproduction of the torch `conv()` helper (pad -> flipped-kernel conv -> crop)."""
    S = x.shape[2]
    padding = 512 - (x.shape[2] - h.shape[2] + 1)
    p = padding // 2
    xp = jnp.pad(x, ((0, 0), (0, 0), (p, p + 1), (p, p + 1)))
    w = jnp.flip(h, (2, 3))
    y_full = jax.lax.conv_general_dilated(
        xp, w, window_strides=(1, 1), padding="VALID",
        dimension_numbers=("NCHW", "OIHW", "NCHW"),
        precision=jax.lax.Precision.HIGHEST)
    s = (512 - S) // 2
    return y_full[:, :, s:s + S, s:s + S]


def letnet_reference(y, x0, psf, c, tau, num_layers, learning_rate):
    S = y.shape[2]
    D = jnp.asarray(_dct_matrix(S), jnp.float32)
    h = jnp.asarray(psf, jnp.float32)
    hf = jnp.flip(h, (2, 3))
    cc = jnp.asarray(c, jnp.float32).reshape(-1)
    tau = jnp.float32(tau)
    lr = jnp.float32(learning_rate)
    hp = jax.lax.Precision.HIGHEST

    def rho(u):
        out = jnp.zeros_like(u)
        for k in range(1, cc.shape[0] + 1):
            out = out + cc[k - 1] * u * jnp.exp(-((k - 1) * u * u) / (2.0 * tau * tau))
        return out

    xt = jnp.asarray(x0, jnp.float32)
    yy = jnp.asarray(y, jnp.float32)
    for _ in range(int(num_layers)):
        a = _conv_torch(h, xt) - yy
        b = xt - lr * _conv_torch(hf, a)
        u = jnp.einsum("ij,ncjk,lk->ncil", D, b, D, precision=hp)
        r = rho(u)
        xt = jnp.einsum("ji,ncjk,kl->ncil", D, r, D, precision=hp)
    return xt


if __name__ == "__main__":
    key = jax.random.PRNGKey(0)
    k_y, k_psf, k_x0 = jax.random.split(key, 3)

    N, C, S = 2, 1, 16
    num_layers = 3
    learning_rate = 0.1

    y = jax.random.normal(k_y, (N, C, S, S), jnp.float32)
    psf = jax.random.normal(k_psf, (1, 1, S, S), jnp.float32) * 0.1
    # Module's forward draws x0 = torch.randn(y.shape); use deterministic JAX randomness.
    x0 = jax.random.normal(k_x0, (N, C, S, S), jnp.float32)

    # Deterministic parameter init (shapes per LetNet.__init__): c is (K, 1), tau scalar.
    c = jnp.array([[1.0], [0.5], [0.25]], jnp.float32)
    tau = jnp.float32(0.5)

    # Reference first (the kernel aliases x0's padded copy into its output buffer).
    ref = jax.block_until_ready(
        letnet_reference(y, x0, psf, c, tau, num_layers, learning_rate))

    out = letnet_forward(y, x0, psf, c, tau, num_layers, learning_rate)
    out = jax.block_until_ready(out)

    assert out.shape == (N, C, S, S)
    assert bool(jnp.isfinite(out).all())
    rel = float(jnp.linalg.norm(out - ref) / (jnp.linalg.norm(ref) + 1e-12))
    assert rel < 5e-2, f"kernel deviates from f32 reference: rel L2 = {rel}"
    print("KERNEL_OK")
</pallas_src>

<mosaic_0001>
module attributes {stable_mosaic.version = 11 : i64} {
  func.func @letnet_kernel(%arg0: i32, %arg1: memref<3xf32, #tpu.memory_space<smem>>, %arg2: memref<1xf32, #tpu.memory_space<smem>>, %arg3: memref<8x256xf32, #tpu.memory_space<vmem>>, %arg4: memref<8x256xf32, #tpu.memory_space<vmem>>, %arg5: memref<256x256xbf16, #tpu.memory_space<vmem>>, %arg6: memref<256x256xbf16, #tpu.memory_space<vmem>>, %arg7: memref<256x256xbf16, #tpu.memory_space<vmem>>, %arg8: memref<256x256xbf16, #tpu.memory_space<vmem>>, %arg9: memref<8x256xf32, #tpu.memory_space<vmem>>, %arg10: memref<8x256xf32, #tpu.memory_space<vmem>>) attributes {dimension_semantics = [#tpu.dimension_semantics<parallel>], iteration_bounds = array<i64: 1>, scalar_prefetch = 0 : i64, scratch_operands = 1 : i64, tpu.core_type = #tpu.core_type<tc>, window_params = [{transform_indices = @transform_0, window_bounds = array<i64: 3>}, {transform_indices = @transform_1, window_bounds = array<i64: 1>}, {transform_indices = @transform_2, window_bounds = array<i64: 8, 256>}, {transform_indices = @transform_3, window_bounds = array<i64: 8, 256>}, {pipeline_mode = #tpu.pipeline_mode<synchronous>, transform_indices = @transform_4, window_bounds = array<i64: 256, 256>}, {pipeline_mode = #tpu.pipeline_mode<synchronous>, transform_indices = @transform_5, window_bounds = array<i64: 256, 256>}, {pipeline_mode = #tpu.pipeline_mode<synchronous>, transform_indices = @transform_6, window_bounds = array<i64: 256, 256>}, {pipeline_mode = #tpu.pipeline_mode<synchronous>, transform_indices = @transform_7, window_bounds = array<i64: 256, 256>}, {transform_indices = @transform_8, window_bounds = array<i64: 8, 256>}]} {
    %c0 = arith.constant 0 : index
    %0 = memref.load %arg2[%c0] : memref<1xf32, #tpu.memory_space<smem>>
    %cst = arith.constant 2.000000e+00 : f32
    %1 = arith.mulf %cst, %0 : f32
    %2 = arith.mulf %1, %0 : f32
    %cst_0 = arith.constant -1.000000e+00 : f32
    %3 = arith.divf %cst_0, %2 : f32
    %c0_1 = arith.constant 0 : index
    %c0_2 = arith.constant 0 : index
    %4 = vector.load %arg3[%c0_1, %c0_2] : memref<8x256xf32, #tpu.memory_space<vmem>>, vector<8x256xf32>
    %5 = arith.truncf %4 : vector<8x256xf32> to vector<8x256xbf16>
    %c0_3 = arith.constant 0 : index
    %c0_4 = arith.constant 0 : index
    %6 = vector.load %arg8[%c0_3, %c0_4] : memref<256x256xbf16, #tpu.memory_space<vmem>>, vector<256x256xbf16>
    %cst_5 = arith.constant dense<0.000000e+00> : vector<8x256xf32>
    %7 = tpu.matmul %5, %6, %cst_5 {dimension_numbers = #tpu.dot_dimension_numbers<[1], [0], [0], [1], [0, 0, 1, 1], [], []>} : vector<8x256xbf16>, vector<256x256xbf16>, vector<8x256xf32> -> vector<8x256xf32>
    %c0_6 = arith.constant 0 : index
    %c0_7 = arith.constant 0 : index
    %8 = vector.load %arg10[%c0_6, %c0_7] : memref<8x256xf32, #tpu.memory_space<vmem>>, vector<8x256xf32>
    tpu.vector_store %arg10[%c0_6, %c0_7], %7 {strides = array<i32>} : memref<8x256xf32, #tpu.memory_space<vmem>>, vector<8x256xf32>,
    %c0_8 = arith.constant 0 : index
    %c0_9 = arith.constant 0 : index
    %9 = vector.load %arg4[%c0_8, %c0_9] : memref<8x256xf32, #tpu.memory_space<vmem>>, vector<8x256xf32>
    %10 = arith.truncf %9 : vector<8x256xf32> to vector<8x256xbf16>
    %c0_10 = arith.constant 0 : index
    %c0_11 = arith.constant 0 : index
    %11 = vector.load %arg5[%c0_10, %c0_11] : memref<256x256xbf16, #tpu.memory_space<vmem>>, vector<256x256xbf16>
    %cst_12 = arith.constant dense<0.000000e+00> : vector<8x256xf32>
    %12 = tpu.matmul %10, %11, %cst_12 {dimension_numbers = #tpu.dot_dimension_numbers<[1], [0], [0], [1], [0, 0, 1, 1], [], []>} : vector<8x256xbf16>, vector<256x256xbf16>, vector<8x256xf32> -> vector<8x256xf32>
    %c0_13 = arith.constant 0 : index
    %c0_14 = arith.constant 0 : index
    %13 = vector.load %arg10[%c0_13, %c0_14] : memref<8x256xf32, #tpu.memory_space<vmem>>, vector<8x256xf32>
    %14 = arith.addf %12, %13 : vector<8x256xf32>
    %c0_15 = arith.constant 0 : index
    %15 = memref.load %arg1[%c0_15] : memref<3xf32, #tpu.memory_space<smem>>
    %16 = vector.broadcast %15 : f32 to vector<8x256xf32>
    %17 = arith.mulf %16, %14 : vector<8x256xf32>
    %18 = arith.mulf %14, %14 : vector<8x256xf32>
    %19 = vector.broadcast %3 : f32 to vector<8x256xf32>
    %20 = arith.mulf %18, %19 : vector<8x256xf32>
    %21 = math.exp %20 : vector<8x256xf32>
    %22 = arith.mulf %14, %21 : vector<8x256xf32>
    %c1 = arith.constant 1 : index
    %23 = memref.load %arg1[%c1] : memref<3xf32, #tpu.memory_space<smem>>
    %24 = vector.broadcast %23 : f32 to vector<8x256xf32>
    %25 = arith.mulf %24, %22 : vector<8x256xf32>
    %26 = arith.addf %17, %25 : vector<8x256xf32>
    %27 = arith.mulf %22, %21 : vector<8x256xf32>
    %c2 = arith.constant 2 : index
    %28 = memref.load %arg1[%c2] : memref<3xf32, #tpu.memory_space<smem>>
    %29 = vector.broadcast %28 : f32 to vector<8x256xf32>
    %30 = arith.mulf %29, %27 : vector<8x256xf32>
    %31 = arith.addf %26, %30 : vector<8x256xf32>
    %32 = arith.truncf %31 : vector<8x256xf32> to vector<8x256xbf16>
    %c0_16 = arith.constant 0 : index
    %c0_17 = arith.constant 0 : index
    %33 = vector.load %arg6[%c0_16, %c0_17] : memref<256x256xbf16, #tpu.memory_space<vmem>>, vector<256x256xbf16>
    %cst_18 = arith.constant dense<0.000000e+00> : vector<8x256xf32>
    %34 = tpu.matmul %32, %33, %cst_18 {dimension_numbers = #tpu.dot_dimension_numbers<[1], [0], [0], [1], [0, 0, 1, 1], [], []>} : vector<8x256xbf16>, vector<256x256xbf16>, vector<8x256xf32> -> vector<8x256xf32>
    %c0_19 = arith.constant 0 : index
    %c0_20 = arith.constant 0 : index
    %35 = vector.load %arg10[%c0_19, %c0_20] : memref<8x256xf32, #tpu.memory_space<vmem>>, vector<8x256xf32>
    %36 = arith.addf %34, %35 : vector<8x256xf32>
    %c0_21 = arith.constant 0 : index
    %37 = memref.load %arg1[%c0_21] : memref<3xf32, #tpu.memory_space<smem>>
    %38 = vector.broadcast %37 : f32 to vector<8x256xf32>
    %39 = arith.mulf %38, %36 : vector<8x256xf32>
    %40 = arith.mulf %36, %36 : vector<8x256xf32>
    %41 = vector.broadcast %3 : f32 to vector<8x256xf32>
    %42 = arith.mulf %40, %41 : vector<8x256xf32>
    %43 = math.exp %42 : vector<8x256xf32>
    %44 = arith.mulf %36, %43 : vector<8x256xf32>
    %c1_22 = arith.constant 1 : index
    %45 = memref.load %arg1[%c1_22] : memref<3xf32, #tpu.memory_space<smem>>
    %46 = vector.broadcast %45 : f32 to vector<8x256xf32>
    %47 = arith.mulf %46, %44 : vector<8x256xf32>
    %48 = arith.addf %39, %47 : vector<8x256xf32>
    %49 = arith.mulf %44, %43 : vector<8x256xf32>
    %c2_23 = arith.constant 2 : index
    %50 = memref.load %arg1[%c2_23] : memref<3xf32, #tpu.memory_space<smem>>
    %51 = vector.broadcast %50 : f32 to vector<8x256xf32>
    %52 = arith.mulf %51, %49 : vector<8x256xf32>
    %53 = arith.addf %48, %52 : vector<8x256xf32>
    %54 = arith.truncf %53 : vector<8x256xf32> to vector<8x256xbf16>
    %c0_24 = arith.constant 0 : index
    %c0_25 = arith.constant 0 : index
    %55 = vector.load %arg6[%c0_24, %c0_25] : memref<256x256xbf16, #tpu.memory_space<vmem>>, vector<256x256xbf16>
    %cst_26 = arith.constant dense<0.000000e+00> : vector<8x256xf32>
    %56 = tpu.matmul %54, %55, %cst_26 {dimension_numbers = #tpu.dot_dimension_numbers<[1], [0], [0], [1], [0, 0, 1, 1], [], []>} : vector<8x256xbf16>, vector<256x256xbf16>, vector<8x256xf32> -> vector<8x256xf32>
    %c0_27 = arith.constant 0 : index
    %c0_28 = arith.constant 0 : index
    %57 = vector.load %arg10[%c0_27, %c0_28] : memref<8x256xf32, #tpu.memory_space<vmem>>, vector<8x256xf32>
    %58 = arith.addf %56, %57 : vector<8x256xf32>
    %c0_29 = arith.constant 0 : index
    %59 = memref.load %arg1[%c0_29] : memref<3xf32, #tpu.memory_space<smem>>
    %60 = vector.broadcast %59 : f32 to vector<8x256xf32>
    %61 = arith.mulf %60, %58 : vector<8x256xf32>
    %62 = arith.mulf %58, %58 : vector<8x256xf32>
    %63 = vector.broadcast %3 : f32 to vector<8x256xf32>
    %64 = arith.mulf %62, %63 : vector<8x256xf32>
    %65 = math.exp %64 : vector<8x256xf32>
    %66 = arith.mulf %58, %65 : vector<8x256xf32>
    %c1_30 = arith.constant 1 : index
    %67 = memref.load %arg1[%c1_30] : memref<3xf32, #tpu.memory_space<smem>>
    %68 = vector.broadcast %67 : f32 to vector<8x256xf32>
    %69 = arith.mulf %68, %66 : vector<8x256xf32>
    %70 = arith.addf %61, %69 : vector<8x256xf32>
    %71 = arith.mulf %66, %65 : vector<8x256xf32>
    %c2_31 = arith.constant 2 : index
    %72 = memref.load %arg1[%c2_31] : memref<3xf32, #tpu.memory_space<smem>>
    %73 = vector.broadcast %72 : f32 to vector<8x256xf32>
    %74 = arith.mulf %73, %71 : vector<8x256xf32>
    %75 = arith.addf %70, %74 : vector<8x256xf32>
    %76 = arith.truncf %75 : vector<8x256xf32> to vector<8x256xbf16>
    %c0_32 = arith.constant 0 : index
    %c0_33 = arith.constant 0 : index
    %77 = vector.load %arg7[%c0_32, %c0_33] : memref<256x256xbf16, #tpu.memory_space<vmem>>, vector<256x256xbf16>
    %cst_34 = arith.constant dense<0.000000e+00> : vector<8x256xf32>
    %78 = tpu.matmul %76, %77, %cst_34 {dimension_numbers = #tpu.dot_dimension_numbers<[1], [0], [0], [1], [0, 0, 1, 1], [], []>} : vector<8x256xbf16>, vector<256x256xbf16>, vector<8x256xf32> -> vector<8x256xf32>
    %c0_35 = arith.constant 0 : index
    %c0_36 = arith.constant 0 : index
    %79 = vector.load %arg9[%c0_35, %c0_36] : memref<8x256xf32, #tpu.memory_space<vmem>>, vector<8x256xf32>
    tpu.vector_store %arg9[%c0_35, %c0_36], %78 {strides = array<i32>} : memref<8x256xf32, #tpu.memory_space<vmem>>, vector<8x256xf32>,
    return
  }
  func.func @transform_0(%arg0: i32) -> i32 {
    %c0_i32 = arith.constant 0 : i32
    %c0_i32_0 = arith.constant 0 : i32
    return %c0_i32 : i32
  }
  func.func @transform_1(%arg0: i32) -> i32 {
    %c0_i32 = arith.constant 0 : i32
    %c0_i32_0 = arith.constant 0 : i32
    return %c0_i32 : i32
  }
  func.func @transform_2(%arg0: i32) -> (i32, i32) {
    %c0_i32 = arith.constant 0 : i32
    %c0_i32_0 = arith.constant 0 : i32
    return %arg0, %c0_i32 : i32, i32
  }
  func.func @transform_3(%arg0: i32) -> (i32, i32) {
    %c0_i32 = arith.constant 0 : i32
    %c0_i32_0 = arith.constant 0 : i32
    return %arg0, %c0_i32 : i32, i32
  }
  func.func @transform_4(%arg0: i32) -> (i32, i32) {
    %c0_i32 = arith.constant 0 : i32
    %c0_i32_0 = arith.constant 0 : i32
    %c0_i32_1 = arith.constant 0 : i32
    return %c0_i32, %c0_i32_0 : i32, i32
  }
  func.func @transform_5(%arg0: i32) -> (i32, i32) {
    %c0_i32 = arith.constant 0 : i32
    %c0_i32_0 = arith.constant 0 : i32
    %c0_i32_1 = arith.constant 0 : i32
    return %c0_i32, %c0_i32_0 : i32, i32
  }
  func.func @transform_6(%arg0: i32) -> (i32, i32) {
    %c0_i32 = arith.constant 0 : i32
    %c0_i32_0 = arith.constant 0 : i32
    %c0_i32_1 = arith.constant 0 : i32
    return %c0_i32, %c0_i32_0 : i32, i32
  }
  func.func @transform_7(%arg0: i32) -> (i32, i32) {
    %c0_i32 = arith.constant 0 : i32
    %c0_i32_0 = arith.constant 0 : i32
    %c0_i32_1 = arith.constant 0 : i32
    return %c0_i32, %c0_i32_0 : i32, i32
  }
  func.func @transform_8(%arg0: i32) -> (i32, i32) {
    %c0_i32 = arith.constant 0 : i32
    %c0_i32_0 = arith.constant 0 : i32
    return %arg0, %c0_i32 : i32, i32
  }
}

module attributes {stable_mosaic.version = 11 : i64} {
  func.func @letnet_kernel(%arg0: i32, %arg1: memref<3xf32, #tpu.memory_space<smem>>, %arg2: memref<1xf32, #tpu.memory_space<smem>>, %arg3: memref<8x256xf32, #tpu.memory_space<vmem>>, %arg4: memref<8x256xf32, #tpu.memory_space<vmem>>, %arg5: memref<256x256xbf16, #tpu.memory_space<vmem>>, %arg6: memref<256x256xbf16, #tpu.memory_space<vmem>>, %arg7: memref<256x256xbf16, #tpu.memory_space<vmem>>, %arg8: memref<256x256xbf16, #tpu.memory_space<vmem>>, %arg9: memref<8x256xf32, #tpu.memory_space<vmem>>, %arg10: memref<8x256xf32, #tpu.memory_space<vmem>>) attributes {dimension_semantics = [#tpu.dimension_semantics<parallel>], iteration_bounds = array<i64: 1>, scalar_prefetch = 0 : i64, scratch_operands = 1 : i64, tpu.core_type = #tpu.core_type<tc>, window_params = [{transform_indices = @transform_0, window_bounds = array<i64: 3>}, {transform_indices = @transform_1, window_bounds = array<i64: 1>}, {transform_indices = @transform_2, window_bounds = array<i64: 8, 256>}, {transform_indices = @transform_3, window_bounds = array<i64: 8, 256>}, {pipeline_mode = #tpu.pipeline_mode<synchronous>, transform_indices = @transform_4, window_bounds = array<i64: 256, 256>}, {pipeline_mode = #tpu.pipeline_mode<synchronous>, transform_indices = @transform_5, window_bounds = array<i64: 256, 256>}, {pipeline_mode = #tpu.pipeline_mode<synchronous>, transform_indices = @transform_6, window_bounds = array<i64: 256, 256>}, {pipeline_mode = #tpu.pipeline_mode<synchronous>, transform_indices = @transform_7, window_bounds = array<i64: 256, 256>}, {transform_indices = @transform_8, window_bounds = array<i64: 8, 256>}]} {
    %c0 = arith.constant 0 : index
    %0 = memref.load %arg2[%c0] : memref<1xf32, #tpu.memory_space<smem>>
    %cst = arith.constant 2.000000e+00 : f32
    %1 = arith.mulf %cst, %0 : f32
    %2 = arith.mulf %1, %0 : f32
    %cst_0 = arith.constant -1.000000e+00 : f32
    %3 = arith.divf %cst_0, %2 : f32
    %c0_1 = arith.constant 0 : index
    %c0_2 = arith.constant 0 : index
    %4 = vector.load %arg3[%c0_1, %c0_2] : memref<8x256xf32, #tpu.memory_space<vmem>>, vector<8x256xf32>
    %5 = arith.truncf %4 : vector<8x256xf32> to vector<8x256xbf16>
    %c0_3 = arith.constant 0 : index
    %c0_4 = arith.constant 0 : index
    %6 = vector.load %arg8[%c0_3, %c0_4] : memref<256x256xbf16, #tpu.memory_space<vmem>>, vector<256x256xbf16>
    %cst_5 = arith.constant dense<0.000000e+00> : vector<8x256xf32>
    %7 = tpu.matmul %5, %6, %cst_5 {dimension_numbers = #tpu.dot_dimension_numbers<[1], [0], [0], [1], [0, 0, 1, 1], [], []>} : vector<8x256xbf16>, vector<256x256xbf16>, vector<8x256xf32> -> vector<8x256xf32>
    %c0_6 = arith.constant 0 : index
    %c0_7 = arith.constant 0 : index
    %8 = vector.load %arg10[%c0_6, %c0_7] : memref<8x256xf32, #tpu.memory_space<vmem>>, vector<8x256xf32>
    tpu.vector_store %arg10[%c0_6, %c0_7], %7 {strides = array<i32>} : memref<8x256xf32, #tpu.memory_space<vmem>>, vector<8x256xf32>,
    %c0_8 = arith.constant 0 : index
    %c0_9 = arith.constant 0 : index
    %9 = vector.load %arg4[%c0_8, %c0_9] : memref<8x256xf32, #tpu.memory_space<vmem>>, vector<8x256xf32>
    %10 = arith.truncf %9 : vector<8x256xf32> to vector<8x256xbf16>
    %c0_10 = arith.constant 0 : index
    %c0_11 = arith.constant 0 : index
    %11 = vector.load %arg5[%c0_10, %c0_11] : memref<256x256xbf16, #tpu.memory_space<vmem>>, vector<256x256xbf16>
    %cst_12 = arith.constant dense<0.000000e+00> : vector<8x256xf32>
    %12 = tpu.matmul %10, %11, %cst_12 {dimension_numbers = #tpu.dot_dimension_numbers<[1], [0], [0], [1], [0, 0, 1, 1], [], []>} : vector<8x256xbf16>, vector<256x256xbf16>, vector<8x256xf32> -> vector<8x256xf32>
    %c0_13 = arith.constant 0 : index
    %c0_14 = arith.constant 0 : index
    %13 = vector.load %arg10[%c0_13, %c0_14] : memref<8x256xf32, #tpu.memory_space<vmem>>, vector<8x256xf32>
    %14 = arith.addf %12, %13 : vector<8x256xf32>
    %c0_15 = arith.constant 0 : index
    %15 = memref.load %arg1[%c0_15] : memref<3xf32, #tpu.memory_space<smem>>
    %16 = vector.broadcast %15 : f32 to vector<8x256xf32>
    %17 = arith.mulf %16, %14 : vector<8x256xf32>
    %18 = arith.mulf %14, %14 : vector<8x256xf32>
    %19 = vector.broadcast %3 : f32 to vector<8x256xf32>
    %20 = arith.mulf %18, %19 : vector<8x256xf32>
    %21 = math.exp %20 : vector<8x256xf32>
    %22 = arith.mulf %14, %21 : vector<8x256xf32>
    %c1 = arith.constant 1 : index
    %23 = memref.load %arg1[%c1] : memref<3xf32, #tpu.memory_space<smem>>
    %24 = vector.broadcast %23 : f32 to vector<8x256xf32>
    %25 = arith.mulf %24, %22 : vector<8x256xf32>
    %26 = arith.addf %17, %25 : vector<8x256xf32>
    %27 = arith.mulf %22, %21 : vector<8x256xf32>
    %c2 = arith.constant 2 : index
    %28 = memref.load %arg1[%c2] : memref<3xf32, #tpu.memory_space<smem>>
    %29 = vector.broadcast %28 : f32 to vector<8x256xf32>
    %30 = arith.mulf %29, %27 : vector<8x256xf32>
    %31 = arith.addf %26, %30 : vector<8x256xf32>
    %32 = arith.truncf %31 : vector<8x256xf32> to vector<8x256xbf16>
    %c0_16 = arith.constant 0 : index
    %c0_17 = arith.constant 0 : index
    %33 = vector.load %arg6[%c0_16, %c0_17] : memref<256x256xbf16, #tpu.memory_space<vmem>>, vector<256x256xbf16>
    %cst_18 = arith.constant dense<0.000000e+00> : vector<8x256xf32>
    %34 = tpu.matmul %32, %33, %cst_18 {dimension_numbers = #tpu.dot_dimension_numbers<[1], [0], [0], [1], [0, 0, 1, 1], [], []>} : vector<8x256xbf16>, vector<256x256xbf16>, vector<8x256xf32> -> vector<8x256xf32>
    %c0_19 = arith.constant 0 : index
    %c0_20 = arith.constant 0 : index
    %35 = vector.load %arg10[%c0_19, %c0_20] : memref<8x256xf32, #tpu.memory_space<vmem>>, vector<8x256xf32>
    %36 = arith.addf %34, %35 : vector<8x256xf32>
    %c0_21 = arith.constant 0 : index
    %37 = memref.load %arg1[%c0_21] : memref<3xf32, #tpu.memory_space<smem>>
    %38 = vector.broadcast %37 : f32 to vector<8x256xf32>
    %39 = arith.mulf %38, %36 : vector<8x256xf32>
    %40 = arith.mulf %36, %36 : vector<8x256xf32>
    %41 = vector.broadcast %3 : f32 to vector<8x256xf32>
    %42 = arith.mulf %40, %41 : vector<8x256xf32>
    %43 = math.exp %42 : vector<8x256xf32>
    %44 = arith.mulf %36, %43 : vector<8x256xf32>
    %c1_22 = arith.constant 1 : index
    %45 = memref.load %arg1[%c1_22] : memref<3xf32, #tpu.memory_space<smem>>
    %46 = vector.broadcast %45 : f32 to vector<8x256xf32>
    %47 = arith.mulf %46, %44 : vector<8x256xf32>
    %48 = arith.addf %39, %47 : vector<8x256xf32>
    %49 = arith.mulf %44, %43 : vector<8x256xf32>
    %c2_23 = arith.constant 2 : index
    %50 = memref.load %arg1[%c2_23] : memref<3xf32, #tpu.memory_space<smem>>
    %51 = vector.broadcast %50 : f32 to vector<8x256xf32>
    %52 = arith.mulf %51, %49 : vector<8x256xf32>
    %53 = arith.addf %48, %52 : vector<8x256xf32>
    %54 = arith.truncf %53 : vector<8x256xf32> to vector<8x256xbf16>
    %c0_24 = arith.constant 0 : index
    %c0_25 = arith.constant 0 : index
    %55 = vector.load %arg6[%c0_24, %c0_25] : memref<256x256xbf16, #tpu.memory_space<vmem>>, vector<256x256xbf16>
    %cst_26 = arith.constant dense<0.000000e+00> : vector<8x256xf32>
    %56 = tpu.matmul %54, %55, %cst_26 {dimension_numbers = #tpu.dot_dimension_numbers<[1], [0], [0], [1], [0, 0, 1, 1], [], []>} : vector<8x256xbf16>, vector<256x256xbf16>, vector<8x256xf32> -> vector<8x256xf32>
    %c0_27 = arith.constant 0 : index
    %c0_28 = arith.constant 0 : index
    %57 = vector.load %arg10[%c0_27, %c0_28] : memref<8x256xf32, #tpu.memory_space<vmem>>, vector<8x256xf32>
    %58 = arith.addf %56, %57 : vector<8x256xf32>
    %c0_29 = arith.constant 0 : index
    %59 = memref.load %arg1[%c0_29] : memref<3xf32, #tpu.memory_space<smem>>
    %60 = vector.broadcast %59 : f32 to vector<8x256xf32>
    %61 = arith.mulf %60, %58 : vector<8x256xf32>
    %62 = arith.mulf %58, %58 : vector<8x256xf32>
    %63 = vector.broadcast %3 : f32 to vector<8x256xf32>
    %64 = arith.mulf %62, %63 : vector<8x256xf32>
    %65 = math.exp %64 : vector<8x256xf32>
    %66 = arith.mulf %58, %65 : vector<8x256xf32>
    %c1_30 = arith.constant 1 : index
    %67 = memref.load %arg1[%c1_30] : memref<3xf32, #tpu.memory_space<smem>>
    %68 = vector.broadcast %67 : f32 to vector<8x256xf32>
    %69 = arith.mulf %68, %66 : vector<8x256xf32>
    %70 = arith.addf %61, %69 : vector<8x256xf32>
    %71 = arith.mulf %66, %65 : vector<8x256xf32>
    %c2_31 = arith.constant 2 : index
    %72 = memref.load %arg1[%c2_31] : memref<3xf32, #tpu.memory_space<smem>>
    %73 = vector.broadcast %72 : f32 to vector<8x256xf32>
    %74 = arith.mulf %73, %71 : vector<8x256xf32>
    %75 = arith.addf %70, %74 : vector<8x256xf32>
    %76 = arith.truncf %75 : vector<8x256xf32> to vector<8x256xbf16>
    %c0_32 = arith.constant 0 : index
    %c0_33 = arith.constant 0 : index
    %77 = vector.load %arg7[%c0_32, %c0_33] : memref<256x256xbf16, #tpu.memory_space<vmem>>, vector<256x256xbf16>
    %cst_34 = arith.constant dense<0.000000e+00> : vector<8x256xf32>
    %78 = tpu.matmul %76, %77, %cst_34 {dimension_numbers = #tpu.dot_dimension_numbers<[1], [0], [0], [1], [0, 0, 1, 1], [], []>} : vector<8x256xbf16>, vector<256x256xbf16>, vector<8x256xf32> -> vector<8x256xf32>
    %c0_35 = arith.constant 0 : index
    %c0_36 = arith.constant 0 : index
    %79 = vector.load %arg9[%c0_35, %c0_36] : memref<8x256xf32, #tpu.memory_space<vmem>>, vector<8x256xf32>
    tpu.vector_store %arg9[%c0_35, %c0_36], %78 {strides = array<i32>} : memref<8x256xf32, #tpu.memory_space<vmem>>, vector<8x256xf32>,
    return
  }
  func.func @transform_0(%arg0: i32) -> i32 {
    %c0_i32 = arith.constant 0 : i32
    %c0_i32_0 = arith.constant 0 : i32
    return %c0_i32 : i32
  }
  func.func @transform_1(%arg0: i32) -> i32 {
    %c0_i32 = arith.constant 0 : i32
    %c0_i32_0 = arith.constant 0 : i32
    return %c0_i32 : i32
  }
  func.func @transform_2(%arg0: i32) -> (i32, i32) {
    %c0_i32 = arith.constant 0 : i32
    %c0_i32_0 = arith.constant 0 : i32
    return %arg0, %c0_i32 : i32, i32
  }
  func.func @transform_3(%arg0: i32) -> (i32, i32) {
    %c0_i32 = arith.constant 0 : i32
    %c0_i32_0 = arith.constant 0 : i32
    return %arg0, %c0_i32 : i32, i32
  }
  func.func @transform_4(%arg0: i32) -> (i32, i32) {
    %c0_i32 = arith.constant 0 : i32
    %c0_i32_0 = arith.constant 0 : i32
    %c0_i32_1 = arith.constant 0 : i32
    return %c0_i32, %c0_i32_0 : i32, i32
  }
  func.func @transform_5(%arg0: i32) -> (i32, i32) {
    %c0_i32 = arith.constant 0 : i32
    %c0_i32_0 = arith.constant 0 : i32
    %c0_i32_1 = arith.constant 0 : i32
    return %c0_i32, %c0_i32_0 : i32, i32
  }
  func.func @transform_6(%arg0: i32) -> (i32, i32) {
    %c0_i32 = arith.constant 0 : i32
    %c0_i32_0 = arith.constant 0 : i32
    %c0_i32_1 = arith.constant 0 : i32
    return %c0_i32, %c0_i32_0 : i32, i32
  }
  func.func @transform_7(%arg0: i32) -> (i32, i32) {
    %c0_i32 = arith.constant 0 : i32
    %c0_i32_0 = arith.constant 0 : i32
    %c0_i32_1 = arith.constant 0 : i32
    return %c0_i32, %c0_i32_0 : i32, i32
  }
  func.func @transform_8(%arg0: i32) -> (i32, i32) {
    %c0_i32 = arith.constant 0 : i32
    %c0_i32_0 = arith.constant 0 : i32
    return %arg0, %c0_i32 : i32, i32
  }
}

</mosaic_0001>

<bundles_post_ra>
// kernel: tpu_custom_call.1
= control target key start
LH: loop header
LB: loop body
LE: loop exit
PB: predicated region body
PF: predicated region fallthrough
CT: control target
= control target key end

     0   :  { %14 = vsyncpa [#allocation7], 0  ;;  %s2417_s0 = inlined_call_operand.vmem [shape: f32[3], index: 0, kind: input, shape index: {}]   ;;  %s2418_s1 = inlined_call_operand.<no memory space> [shape: f32[1], index: 1, kind: input, shape index: {}]   ;;  %s2419_s2 = inlined_call_operand.vmem [shape: f32[8,256], index: 2, kind: input, shape index: {}]   ;;  %s2420_s3 = inlined_call_operand.hbm [shape: f32[8,256], index: 3, kind: input, shape index: {}, may-alias: {3,8}]   ;;  %s2421_s4 = inlined_call_operand.hbm [shape: bf16[256,256], index: 4, kind: input, shape index: {}]   ;;  %s2422_s5 = inlined_call_operand.hbm [shape: bf16[256,256], index: 5, kind: input, shape index: {}]   ;;  %s2423_s6 = inlined_call_operand.hbm [shape: bf16[256,256], index: 6, kind: input, shape index: {}]   ;;  %s2424_s7 = inlined_call_operand.hbm [shape: bf16[256,256], index: 7, kind: input, shape index: {}]   ;;  %s2425_s8 = inlined_call_operand.hbm [shape: f32[8,256], index: 8, kind: output, shape index: {}, may-alias: {3,8}]  }
   0x1   :  { %15 = vsyncpa [#allocation5], 0 }
   0x2   :  { %16 = vsyncpa [#allocation10], 0 }
   0x3   :  { %17 = vsyncpa [#allocation13], 0  ;;  %s47_s29 = sshll.u32 %s2421_s4, 4  ;;  %s48_s29 = int_to_ptr.hbm [resolvable:$true] %s47_s29 }
   0x4   :  { %18 = vsyncpa [#allocation6], 0  ;;  %s2114_s30 = smov [#allocation9]   ;;  %s73_s12 = sshll.u32 %s2423_s6, 4  ;;  %s74_s12 = int_to_ptr.hbm [resolvable:$true] %s73_s12 }
   0x5   :  { %s49_s9 = sshll.u32 %s2114_s30, 4  ;;  %s2115_s13 = smov 128   ;;  %s50_s9 = int_to_ptr.vmem [resolvable:$true] %s49_s9 }
   0x6   :  { %s2116_s14 = smov 8   ;;  %s2117_s15 = smov [#allocation12]  }
   0x7   :  { %55 = dma.hbm_to_vmem [thread:$0]  %s48_s29, 4096, %s50_s9, [#allocation10], %s2115_s13, %s2115_s13, %s2116_s14  }
   0x8   :  { %s75_s16 = sshll.u32 %s2117_s15, 4  ;;  %s24_s18 = sshll.u32 %s2417_s0, 4  ;;  %s76_s16 = int_to_ptr.vmem [resolvable:$true] %s75_s16  ;;  %s25_s18 = int_to_ptr.vmem [resolvable:$true] %s24_s18 }
   0x9   :  { %81 = dma.hbm_to_vmem [thread:$0]  %s74_s12, 4096, %s76_s16, [#allocation13], %s2115_s13, %s2115_s13, %s2116_s14  }
   0xa   :  { %s37_s20 = sshll.u32 %s2420_s3, 4  ;;  %s2118_s21 = smov [#allocation4]   ;;  %s38_s20 = int_to_ptr.hbm [resolvable:$true] %s37_s20 }
   0xb   :  { %27 = dma.vmem_to_smem %s25_s18, 16, %s2118_s21, [#allocation7]  }
   0xc   :  { %s2119_s22 = smov [#allocation8]   ;;  %s60_s26 = sshll.u32 %s2422_s5, 4  ;;  %s61_s26 = int_to_ptr.hbm [resolvable:$true] %s60_s26 }
   0xd   :  { %s39_s23 = sshll.u32 %s2119_s22, 4  ;;  %s86_s28 = sshll.u32 %s2424_s7, 4  ;;  %s40_s23 = int_to_ptr.vmem [resolvable:$true] %s39_s23  ;;  %s87_s28 = int_to_ptr.hbm [resolvable:$true] %s86_s28 }
   0xe   :  { %42 = dma.hbm_to_vmem [thread:$0]  %s38_s20, 256, %s40_s23, [#allocation5]  }
   0xf   :  { %s2120_s29 = smov [#allocation11]   ;;  %s2121_s3 = smov [#allocation14]  }
  0x10   :  { %s62_s30 = sshll.u32 %s2120_s29, 4  ;;  %s88_s9 = sshll.u32 %s2121_s3, 4  ;;  %s63_s30 = int_to_ptr.vmem [resolvable:$true] %s62_s30  ;;  %s89_s9 = int_to_ptr.vmem [resolvable:$true] %s88_s9 }
  0x11   :  { %68 = dma.hbm_to_vmem [thread:$0]  %s61_s26, 4096, %s63_s30, [#allocation10], %s2115_s13, %s2115_s13, %s2116_s14  }
  0x12   :  { %94 = dma.hbm_to_vmem [thread:$0]  %s87_s28, 4096, %s89_s9, [#allocation13], %s2115_s13, %s2115_s13, %s2116_s14  }
  0x13   :  { %2104 = dma.done.wait [#allocation7], 16  }
  0x14   :  { %2105 = vsyncadd [#allocation7], 4294967280 }
  0x15   :  { %2106 = dma.done.wait [#allocation5], 256  }
  0x16   :  { %2107 = vsyncadd [#allocation5], 4294967040 }
  0x17   :  { %2108 = dma.done.wait [#allocation10], 8192  }
  0x18   :  { %2109 = vsyncadd [#allocation10], 4294959104 }
  0x19   :  { %2110 = dma.done.wait [#allocation13], 8192  }
  0x1a   :  { %2111 = vsyncadd [#allocation13], 4294959104 }
  0x1b   :  { %119 = sfence }
  0x1c   :  { %v1339_v0 = vld [vmem:[#allocation14 + $0x70] sm:$0xf]  ;;  %v1810_v1 = vld [vmem:[#allocation14 + $0x74] sm:$0xf0]  ;;  %v1809_v5 = vld [vmem:[#allocation14 + $0x74] sm:$0xf] }
  0x1d   :  { %v1403_v2 = vld [vmem:[#allocation14 + $0xf0] sm:$0xf]  ;;  %v1340_v3 = vor.u32 %v1810_v1, %v1339_v0  ;;  %v1826_v4 = vld [vmem:[#allocation14 + $0xf4] sm:$0xf0]  ;;  %v1341_v6 = vld [vmem:[#allocation14 + $0x78] sm:$0xf0] }
  0x1e   :  { %v1404_v7 = vor.u32 %v1826_v4, %v1403_v2  ;;  %v1344_v8 = vor.u32 %v1809_v5, %v1341_v6  ;;  %v1825_v9 = vld [vmem:[#allocation14 + $0xf4] sm:$0xf]  ;;  %v1405_v10 = vld [vmem:[#allocation14 + $0xf8] sm:$0xf0]  ;;  %v1331_v11 = vld [vmem:[#allocation14 + $0x60] sm:$0xf] }
  0x1f   :  { %336 = vmatpush.bf16.msra.mxu0 %v1340_v3  ;;  %v1408_v12 = vor.u32 %v1825_v9, %v1405_v10  ;;  %v1808_v13 = vld [vmem:[#allocation14 + $0x64] sm:$0xf0]  ;;  %v1395_v14 = vld [vmem:[#allocation14 + $0xe0] sm:$0xf]  ;;  %v1807_v18 = vld [vmem:[#allocation14 + $0x64] sm:$0xf] }
  0x20   :  { %v1824_v15 = vld [vmem:[#allocation14 + $0xe4] sm:$0xf0]  ;;  %349 = vmatpush.bf16.msra.mxu1 %v1404_v7  ;;  %362 = vmatpush.bf16.msra.mxu2 %v1344_v8  ;;  %v1332_v16 = vor.u32 %v1808_v13, %v1331_v11  ;;  %v1333_v19 = vld [vmem:[#allocation14 + $0x68] sm:$0xf0]  ;;  %v1823_v20 = vld [vmem:[#allocation14 + $0xe4] sm:$0xf] }
  0x21   :  { %v1396_v17 = vor.u32 %v1824_v15, %v1395_v14  ;;  %375 = vmatpush.bf16.msra.mxu3 %v1408_v12  ;;  %v1336_v21 = vor.u32 %v1807_v18, %v1333_v19  ;;  %v1397_v22 = vld [vmem:[#allocation14 + $0xe8] sm:$0xf0]  ;;  %v1323_v23 = vld [vmem:[#allocation14 + $0x50] sm:$0xf]  ;;  %v1806_v24 = vld [vmem:[#allocation14 + $0x54] sm:$0xf0] }
  0x22   :  { %v1400_v25 = vor.u32 %v1823_v20, %v1397_v22  ;;  %v1387_v26 = vld [vmem:[#allocation14 + $0xd0] sm:$0xf]  ;;  %v1822_v27 = vld [vmem:[#allocation14 + $0xd4] sm:$0xf0]  ;;  %v1805_v28 = vld [vmem:[#allocation14 + $0x54] sm:$0xf]  ;;  %v1324_v29 = vor.u32 %v1806_v24, %v1323_v23 }
  0x23   :  { %337 = vmatpush.bf16.msra.mxu0 %v1332_v16  ;;  %v1325_v30 = vld [vmem:[#allocation14 + $0x58] sm:$0xf0]  ;;  %v1821_v31 = vld [vmem:[#allocation14 + $0xd4] sm:$0xf]  ;;  %v1388_v33 = vor.u32 %v1822_v27, %v1387_v26  ;;  %v1315_v35 = vld [vmem:[#allocation14 + $0x40] sm:$0xf] }
  0x24   :  { %v1389_v32 = vld [vmem:[#allocation14 + $0xd8] sm:$0xf0]  ;;  %350 = vmatpush.bf16.msra.mxu1 %v1396_v17  ;;  %363 = vmatpush.bf16.msra.mxu2 %v1336_v21  ;;  %v1328_v34 = vor.u32 %v1805_v28, %v1325_v30  ;;  %v1804_v36 = vld [vmem:[#allocation14 + $0x44] sm:$0xf0]  ;;  %v1379_v37 = vld [vmem:[#allocation14 + $0xc0] sm:$0xf] }
  0x25   :  { %376 = vmatpush.bf16.msra.mxu3 %v1400_v25  ;;  %v1392_v38 = vor.u32 %v1821_v31, %v1389_v32  ;;  %v1820_v39 = vld [vmem:[#allocation14 + $0xc4] sm:$0xf0]  ;;  %v1803_v40 = vld [vmem:[#allocation14 + $0x44] sm:$0xf]  ;;  %v1317_v41 = vld [vmem:[#allocation14 + $0x48] sm:$0xf0]  ;;  %v1316_v44 = vor.u32 %v1804_v36, %v1315_v35 }
  0x26   :  { %v1819_v42 = vld [vmem:[#allocation14 + $0xc4] sm:$0xf]  ;;  %v1381_v43 = vld [vmem:[#allocation14 + $0xc8] sm:$0xf0]  ;;  %v1380_v45 = vor.u32 %v1820_v39, %v1379_v37  ;;  %v1320_v46 = vor.u32 %v1803_v40, %v1317_v41  ;;  %v1307_v47 = vld [vmem:[#allocation14 + $0x30] sm:$0xf] }
  0x27   :  { %338 = vmatpush.bf16.msra.mxu0 %v1324_v29  ;;  %v1802_v48 = vld [vmem:[#allocation14 + $0x34] sm:$0xf0]  ;;  %v1371_v49 = vld [vmem:[#allocation14 + $0xb0] sm:$0xf]  ;;  %v1384_v50 = vor.u32 %v1819_v42, %v1381_v43  ;;  %v1801_v52 = vld [vmem:[#allocation14 + $0x34] sm:$0xf] }
  0x28   :  { %351 = vmatpush.bf16.msra.mxu1 %v1388_v33  ;;  %364 = vmatpush.bf16.msra.mxu2 %v1328_v34  ;;  %v1818_v51 = vld [vmem:[#allocation14 + $0xb4] sm:$0xf0]  ;;  %v1309_v53 = vld [vmem:[#allocation14 + $0x38] sm:$0xf0]  ;;  %v1817_v54 = vld [vmem:[#allocation14 + $0xb4] sm:$0xf]  ;;  %v1308_v56 = vor.u32 %v1802_v48, %v1307_v47 }
  0x29   :  { %377 = vmatpush.bf16.msra.mxu3 %v1392_v38  ;;  %v1373_v55 = vld [vmem:[#allocation14 + $0xb8] sm:$0xf0]  ;;  %v1372_v57 = vor.u32 %v1818_v51, %v1371_v49  ;;  %v1312_v58 = vor.u32 %v1801_v52, %v1309_v53  ;;  %v1299_v59 = vld [vmem:[#allocation14 + $0x20] sm:$0xf]  ;;  %v1800_v60 = vld [vmem:[#allocation14 + $0x24] sm:$0xf0] }
  0x2a   :  { %v1363_v61 = vld [vmem:[#allocation14 + $0xa0] sm:$0xf]  ;;  %v1376_v62 = vor.u32 %v1817_v54, %v1373_v55  ;;  %v1816_v63 = vld [vmem:[#allocation14 + $0xa4] sm:$0xf0]  ;;  %v1799_v0 = vld [vmem:[#allocation14 + $0x24] sm:$0xf]  ;;  %v1300_v4 = vor.u32 %v1800_v60, %v1299_v59 }
  0x2b   :  { %339 = vmatpush.bf16.msra.mxu0 %v1316_v44  ;;  %v1301_v1 = vld [vmem:[#allocation14 + $0x28] sm:$0xf0]  ;;  %v1815_v2 = vld [vmem:[#allocation14 + $0xa4] sm:$0xf]  ;;  %v1364_v5 = vor.u32 %v1816_v63, %v1363_v61  ;;  %v1291_v7 = vld [vmem:[#allocation14 + $0x10] sm:$0xf] }
  0x2c   :  { %352 = vmatpush.bf16.msra.mxu1 %v1380_v45  ;;  %365 = vmatpush.bf16.msra.mxu2 %v1320_v46  ;;  %v1365_v3 = vld [vmem:[#allocation14 + $0xa8] sm:$0xf0]  ;;  %v1304_v6 = vor.u32 %v1799_v0, %v1301_v1  ;;  %v1798_v8 = vld [vmem:[#allocation14 + $0x14] sm:$0xf0]  ;;  %v1355_v9 = vld [vmem:[#allocation14 + $0x90] sm:$0xf] }
  0x2d   :  { %378 = vmatpush.bf16.msra.mxu3 %v1384_v50  ;;  %v1368_v10 = vor.u32 %v1815_v2, %v1365_v3  ;;  %v1814_v11 = vld [vmem:[#allocation14 + $0x94] sm:$0xf0]  ;;  %v1797_v12 = vld [vmem:[#allocation14 + $0x14] sm:$0xf]  ;;  %v1293_v13 = vld [vmem:[#allocation14 + $0x18] sm:$0xf0]  ;;  %v1292_v16 = vor.u32 %v1798_v8, %v1291_v7 }
  0x2e   :  { %v1813_v14 = vld [vmem:[#allocation14 + $0x94] sm:$0xf]  ;;  %v1357_v15 = vld [vmem:[#allocation14 + $0x98] sm:$0xf0]  ;;  %v1283_v17 = vld [vmem:[#allocation14] sm:$0xf]  ;;  %v1356_v20 = vor.u32 %v1814_v11, %v1355_v9  ;;  %v1296_v21 = vor.u32 %v1797_v12, %v1293_v13 }
  0x2f   :  { %340 = vmatpush.bf16.msra.mxu0 %v1308_v56  ;;  %v1796_v18 = vld [vmem:[#allocation14 + $0x4] sm:$0xf0]  ;;  %v1347_v19 = vld [vmem:[#allocation14 + $0x80] sm:$0xf]  ;;  %v1795_v23 = vld [vmem:[#allocation14 + $0x4] sm:$0xf]  ;;  %v1360_v25 = vor.u32 %v1813_v14, %v1357_v15 }
  0x30   :  { %353 = vmatpush.bf16.msra.mxu1 %v1372_v57  ;;  %366 = vmatpush.bf16.msra.mxu2 %v1312_v58  ;;  %v1812_v22 = vld [vmem:[#allocation14 + $0x84] sm:$0xf0]  ;;  %v1285_v24 = vld [vmem:[#allocation14 + $0x8] sm:$0xf0]  ;;  %v1811_v26 = vld [vmem:[#allocation14 + $0x84] sm:$0xf]  ;;  %v1284_v31 = vor.u32 %v1796_v18, %v1283_v17 }
  0x31   :  { %379 = vmatpush.bf16.msra.mxu3 %v1376_v62  ;;  %v1349_v27 = vld [vmem:[#allocation14 + $0x88] sm:$0xf0]  ;;  %v1467_v28 = vld [vmem:[#allocation9 + $0x70] sm:$0xf]  ;;  %v1842_v29 = vld [vmem:[#allocation9 + $0x74] sm:$0xf0]  ;;  %v1348_v35 = vor.u32 %v1812_v22, %v1347_v19  ;;  %v1288_v36 = vor.u32 %v1795_v23, %v1285_v24 }
  0x32   :  { %v1531_v30 = vld [vmem:[#allocation9 + $0xf0] sm:$0xf]  ;;  %s121_s10 = smul.f32 2.0, %s2418_s1  ;;  %v1858_v32 = vld [vmem:[#allocation9 + $0xf4] sm:$0xf0]  ;;  %v1352_v40 = vor.u32 %v1811_v26, %v1349_v27  ;;  %v1468_v41 = vor.u32 %v1842_v29, %v1467_v28  ;;  %s640_s4 = sld [smem:[#allocation4]] }
  0x33   :  { %341 = vmatpush.bf16.msra.mxu0 %v1300_v4  ;;  %v1841_v33 = vld [vmem:[#allocation9 + $0x74] sm:$0xf]  ;;  %v1469_v34 = vld [vmem:[#allocation9 + $0x78] sm:$0xf0]  ;;  %v1532_v43 = vor.u32 %v1858_v32, %v1531_v30  ;;  %v1459_v45 = vld [vmem:[#allocation9 + $0x60] sm:$0xf] }
  0x34   :  { %354 = vmatpush.bf16.msra.mxu1 %v1364_v5  ;;  %367 = vmatpush.bf16.msra.mxu2 %v1304_v6  ;;  %v1857_v37 = vld [vmem:[#allocation9 + $0xf4] sm:$0xf]  ;;  %v1533_v38 = vld [vmem:[#allocation9 + $0xf8] sm:$0xf0]  ;;  %v1472_v44 = vor.u32 %v1841_v33, %v1469_v34  ;;  %v1840_v46 = vld [vmem:[#allocation9 + $0x64] sm:$0xf0]  ;;  %s122_s17 = smul.f32 %s121_s10, %s2418_s1 }
  0x35   :  { %380 = vmatpush.bf16.msra.mxu3 %v1368_v10  ;;  %v140_v39 = vld [vmem:[%s2419_s2] sm:$0xff]  ;;  %v141_v42 = vld [vmem:[%s2419_s2 + $0x8] sm:$0xff]  ;;  %v1523_v47 = vld [vmem:[#allocation9 + $0xe0] sm:$0xf]  ;;  %v1536_v48 = vor.u32 %v1857_v37, %v1533_v38  ;;  %v1460_v56 = vor.u32 %v1840_v46, %v1459_v45  ;;  %s1537_s18 = sld [smem:[#allocation4 + $0x1]]  ;;  %s2122_s19 = smov [#allocation15]  }
  0x36   :  { %v1856_v49 = vld [vmem:[#allocation9 + $0xe4] sm:$0xf0]  ;;  %v1839_v50 = vld [vmem:[#allocation9 + $0x64] sm:$0xf]  ;;  %v1461_v51 = vld [vmem:[#allocation9 + $0x68] sm:$0xf0]  ;;  %v142_v52 = vpack.c.bf16 %v140_v39, %v140_v39  ;;  %v143_v55 = vpack.c.bf16 %v141_v42, %v141_v42  ;;  %v2210_v62 = vstv %s122_s17 }
  0x37   :  { %342 = vmatpush.bf16.msra.mxu0 %v1292_v16  ;;  %v1855_v53 = vld [vmem:[#allocation9 + $0xe4] sm:$0xf]  ;;  %v1525_v54 = vld [vmem:[#allocation9 + $0xe8] sm:$0xf0]  ;;  %v1524_v57 = vor.u32 %v1856_v49, %v1523_v47  ;;  %v1464_v58 = vor.u32 %v1839_v50, %v1461_v51  ;;  %v1451_v59 = vld [vmem:[#allocation9 + $0x50] sm:$0xf]  ;;  %1934 = vrcp.f32 %v2210_v62  ;;  %vm129_vm0 = vweird.f32 %v2210_v62 }
  0x38   :  { %355 = vmatpush.bf16.msra.mxu1 %v1356_v20  ;;  %368 = vmatpush.bf16.msra.mxu2 %v1296_v21  ;;  %v1838_v60 = vld [vmem:[#allocation9 + $0x54] sm:$0xf0]  ;;  %v1515_v61 = vld [vmem:[#allocation9 + $0xd0] sm:$0xf]  ;;  %v1528_v63 = vor.u32 %v1855_v53, %v1525_v54  ;;  %v1837_v1 = vld [vmem:[#allocation9 + $0x54] sm:$0xf] }
  0x39   :  { %381 = vmatpush.bf16.msra.mxu3 %v1360_v25  ;;  %v1854_v0 = vld [vmem:[#allocation9 + $0xd4] sm:$0xf0]  ;;  %v1453_v2 = vld [vmem:[#allocation9 + $0x58] sm:$0xf0]  ;;  %v1853_v3 = vld [vmem:[#allocation9 + $0xd4] sm:$0xf]  ;;  %v1452_v5 = vor.u32 %v1838_v60, %v1451_v59 }
  0x3a   :  { %v1517_v4 = vld [vmem:[#allocation9 + $0xd8] sm:$0xf0]  ;;  %v1516_v6 = vor.u32 %v1854_v0, %v1515_v61  ;;  %v1456_v7 = vor.u32 %v1837_v1, %v1453_v2  ;;  %v1443_v8 = vld [vmem:[#allocation9 + $0x40] sm:$0xf]  ;;  %v1836_v9 = vld [vmem:[#allocation9 + $0x44] sm:$0xf0] }
  0x3b   :  { %343 = vmatpush.bf16.msra.mxu0 %v1284_v31  ;;  %v1507_v10 = vld [vmem:[#allocation9 + $0xc0] sm:$0xf]  ;;  %v1520_v11 = vor.u32 %v1853_v3, %v1517_v4  ;;  %v1852_v12 = vld [vmem:[#allocation9 + $0xc4] sm:$0xf0]  ;;  %v1835_v13 = vld [vmem:[#allocation9 + $0x44] sm:$0xf]  ;;  %v1444_v18 = vor.u32 %v1836_v9, %v1443_v8 }
  0x3c   :  { %356 = vmatpush.bf16.msra.mxu1 %v1348_v35  ;;  %369 = vmatpush.bf16.msra.mxu2 %v1288_v36  ;;  %v1445_v14 = vld [vmem:[#allocation9 + $0x48] sm:$0xf0]  ;;  %v1851_v15 = vld [vmem:[#allocation9 + $0xc4] sm:$0xf]  ;;  %v1435_v19 = vld [vmem:[#allocation9 + $0x30] sm:$0xf]  ;;  %v1508_v20 = vor.u32 %v1852_v12, %v1507_v10 }
  0x3d   :  { %382 = vmatpush.bf16.msra.mxu3 %v1352_v40  ;;  %v1509_v16 = vld [vmem:[#allocation9 + $0xc8] sm:$0xf0]  ;;  %v1935_v17 = vpop.eup %1934  ;;  %v1448_v21 = vor.u32 %v1835_v13, %v1445_v14  ;;  %v1834_v22 = vld [vmem:[#allocation9 + $0x34] sm:$0xf0]  ;;  %v1499_v23 = vld [vmem:[#allocation9 + $0xb0] sm:$0xf] }
  0x3e   :  { %344 = vmatmul.bf16.vlgmr.msra.gmra.mxu0 %v142_v52  ;;  %v1850_v24 = vld [vmem:[#allocation9 + $0xb4] sm:$0xf0]  ;;  %v125_v25 = vmul.f32 %v1935_v17, %v2210_v62  ;;  %v1512_v26 = vor.u32 %v1851_v15, %v1509_v16  ;;  %v1833_v27 = vld [vmem:[#allocation9 + $0x34] sm:$0xf]  ;;  %v1437_v28 = vld [vmem:[#allocation9 + $0x38] sm:$0xf0]  ;;  %vm130_vm1 = vweird.f32 %v1935_v17  ;;  %v1436_v33 = vor.u32 %v1834_v22, %v1435_v19 }
  0x3f   :  { %588 = vmatpush.bf16.msrb.mxu0 %v1468_v41  ;;  %370 = vmatmul.bf16.vlgmr.msra.gmra.mxu2 %v142_v52  ;;  %v1849_v29 = vld [vmem:[#allocation9 + $0xb4] sm:$0xf]  ;;  %v1501_v30 = vld [vmem:[#allocation9 + $0xb8] sm:$0xf0]  ;;  %v133_v32 = vand.u32 2147483647, %v2210_v62  ;;  %v1500_v36 = vor.u32 %v1850_v24, %v1499_v23  ;;  %v1440_v37 = vor.u32 %v1833_v27, %v1437_v28  ;;  %vm2220_vm2 = vmor %vm129_vm0, %vm130_vm1 }
  0x40   :  { %601 = vmatpush.bf16.msrb.mxu1 %v1532_v43  ;;  %614 = vmatpush.bf16.msrb.mxu2 %v1472_v44  ;;  %v126_v31 = vsub.f32 1.0, %v125_v25  ;;  %v1427_v34 = vld [vmem:[#allocation9 + $0x20] sm:$0xf]  ;;  %v135_v35 = vand.u32 2147483648, %v2210_v62  ;;  %v1832_v38 = vld [vmem:[#allocation9 + $0x24] sm:$0xf0]  ;;  %v1504_v42 = vor.u32 %v1849_v29, %v1501_v30 }
  0x41   :  { %627 = vmatpush.bf16.msrb.mxu3 %v1536_v48  ;;  %357 = vmatmul.bf16.vlgmr.msra.gmra.mxu1 %v143_v55  ;;  %v1491_v39 = vld [vmem:[#allocation9 + $0xa0] sm:$0xf]  ;;  %v1848_v40 = vld [vmem:[#allocation9 + $0xa4] sm:$0xf0]  ;;  %v1831_v43 = vld [vmem:[#allocation9 + $0x24] sm:$0xf]  ;;  %v1428_v51 = vor.u32 %v1832_v38, %v1427_v34 }
  0x42   :  { %383 = vmatmul.bf16.vlgmr.msra.gmra.mxu3 %v143_v55  ;;  %v127_v41 = vmul.f32 %v1935_v17, %v126_v31  ;;  %v1429_v44 = vld [vmem:[#allocation9 + $0x28] sm:$0xf0]  ;;  %v136_v46 = vor.u32 1.1754944e-38, %v135_v35  ;;  %v1847_v47 = vld [vmem:[#allocation9 + $0xa4] sm:$0xf]  ;;  %vm2224_vm3 = vcmp.eq.f32.partialorder %v133_v32, 8.507059e+37  ;;  %v1492_v52 = vor.u32 %v1848_v40, %v1491_v39 }
  0x43   :  { %589 = vmatpush.bf16.msrb.mxu0 %v1460_v56  ;;  %v1493_v48 = vld [vmem:[#allocation9 + $0xa8] sm:$0xf0]  ;;  %v1432_v53 = vor.u32 %v1831_v43, %v1429_v44  ;;  %v1419_v54 = vld [vmem:[#allocation9 + $0x10] sm:$0xf]  ;;  %v1830_v55 = vld [vmem:[#allocation9 + $0x14] sm:$0xf0] }
  0x44   :  { %602 = vmatpush.bf16.msrb.mxu1 %v1524_v57  ;;  %615 = vmatpush.bf16.msrb.mxu2 %v1464_v58  ;;  %v128_v49 = vadd.f32 %v1935_v17, %v127_v41  ;;  %v1483_v56 = vld [vmem:[#allocation9 + $0x90] sm:$0xf]  ;;  %v1496_v58 = vor.u32 %v1847_v47, %v1493_v48  ;;  %v1846_v59 = vld [vmem:[#allocation9 + $0x94] sm:$0xf0]  ;;  %v1829_v60 = vld [vmem:[#allocation9 + $0x14] sm:$0xf]  ;;  %v1420_v1 = vor.u32 %v1830_v55, %v1419_v54 }
  0x45   :  { %628 = vmatpush.bf16.msrb.mxu3 %v1528_v63  ;;  %v1421_v61 = vld [vmem:[#allocation9 + $0x18] sm:$0xf0]  ;;  %v1845_v63 = vld [vmem:[#allocation9 + $0x94] sm:$0xf]  ;;  %v1484_v2 = vor.u32 %v1846_v59, %v1483_v56  ;;  %v1411_v4 = vld [vmem:[#allocation9] sm:$0xf] }
  0x46   :  { %v132_v57 = vsel %vm2220_vm2, %v1935_v17, %v128_v49  ;;  %v1485_v0 = vld [vmem:[#allocation9 + $0x98] sm:$0xf0]  ;;  %v1424_v3 = vor.u32 %v1829_v60, %v1421_v61  ;;  %v1844_v8 = vld [vmem:[#allocation9 + $0x84] sm:$0xf0]  ;;  %v1827_v9 = vld [vmem:[#allocation9 + $0x4] sm:$0xf] }
  0x47   :  { %590 = vmatpush.bf16.msrb.mxu0 %v1452_v5  ;;  %v137_v62 = vsel %vm2224_vm3, %v136_v46, %v132_v57  ;;  %v1828_v5 = vld [vmem:[#allocation9 + $0x4] sm:$0xf0]  ;;  %v1413_v10 = vld [vmem:[#allocation9 + $0x8] sm:$0xf0]  ;;  %v390_v14 = vld [vmem:[#allocation8] sm:$0xff]  ;;  %s1538_s6 = sld [smem:[#allocation4 + $0x2]] }
  0x48   :  { %603 = vmatpush.bf16.msrb.mxu1 %v1516_v6  ;;  %616 = vmatpush.bf16.msrb.mxu2 %v1456_v7  ;;  %1923 = vpush %v137_v62  ;;  %v1475_v6 = vld [vmem:[#allocation9 + $0x80] sm:$0xf]  ;;  %v1488_v7 = vor.u32 %v1845_v63, %v1485_v0  ;;  %v1477_v12 = vld [vmem:[#allocation9 + $0x88] sm:$0xf0]  ;;  %v1412_v13 = vor.u32 %v1828_v5, %v1411_v4  ;;  %v391_v17 = vld [vmem:[#allocation8 + $0x8] sm:$0xff]  ;;  %s1266_s20 = sshll.u32 %s2122_s19, 4  ;;  %s1267_s20 = int_to_ptr.vmem [resolvable:$true] %s1266_s20 }
  0x49   :  { %629 = vmatpush.bf16.msrb.mxu3 %v1520_v11  ;;  %v1843_v11 = vld [vmem:[#allocation9 + $0x84] sm:$0xf]  ;;  %v1476_v15 = vor.u32 %v1844_v8, %v1475_v6  ;;  %v1416_v16 = vor.u32 %v1827_v9, %v1413_v10  ;;  %v392_v19 = vpack.c.bf16 %v390_v14, %v390_v14  ;;  %v1874_v22 = vld [vmem:[#allocation11 + $0x74] sm:$0xf0]  ;;  %v1873_v23 = vld [vmem:[#allocation11 + $0x74] sm:$0xf] }
  0x4a   :  { %v1599_v25 = vld [vmem:[#allocation11 + $0x78] sm:$0xf0]  ;;  %v1589_v27 = vld [vmem:[#allocation11 + $0x60] sm:$0xf]  ;;  %v1872_v28 = vld [vmem:[#allocation11 + $0x64] sm:$0xf0] }
  0x4b   :  { %591 = vmatpush.bf16.msrb.mxu0 %v1444_v18  ;;  %v1480_v18 = vor.u32 %v1843_v11, %v1477_v12  ;;  %v1871_v29 = vld [vmem:[#allocation11 + $0x64] sm:$0xf]  ;;  %v2238_v30 = vor.u32 %v1872_v28, %v1589_v27  ;;  %v1591_v31 = vld [vmem:[#allocation11 + $0x68] sm:$0xf0]  ;;  %v1890_v34 = vld [vmem:[#allocation11 + $0xf4] sm:$0xf0] }
  0x4c   :  { %604 = vmatpush.bf16.msrb.mxu1 %v1508_v20  ;;  %617 = vmatpush.bf16.msrb.mxu2 %v1448_v21  ;;  %v393_v20 = vpack.c.bf16 %v391_v17, %v391_v17  ;;  %v1597_v21 = vld [vmem:[#allocation11 + $0x70] sm:$0xf]  ;;  %v2240_v32 = vor.u32 %v1871_v29, %v1591_v31  ;;  %v1889_v35 = vld [vmem:[#allocation11 + $0xf4] sm:$0xf]  ;;  %v1870_v41 = vld [vmem:[#allocation11 + $0x54] sm:$0xf0] }
  0x4d   :  { %630 = vmatpush.bf16.msrb.mxu3 %v1512_v26  ;;  %v2232_v24 = vor.u32 %v1874_v22, %v1597_v21  ;;  %v2234_v26 = vor.u32 %v1873_v23, %v1599_v25  ;;  %v1581_v40 = vld [vmem:[#allocation11 + $0x50] sm:$0xf]  ;;  %v1583_v45 = vld [vmem:[#allocation11 + $0x58] sm:$0xf0]  ;;  %v1653_v47 = vld [vmem:[#allocation11 + $0xe0] sm:$0xf] }
  0x4e   :  { %v2253_v44 = vor.u32 %v1870_v41, %v1581_v40  ;;  %v1888_v48 = vld [vmem:[#allocation11 + $0xe4] sm:$0xf0]  ;;  %v1887_v49 = vld [vmem:[#allocation11 + $0xe4] sm:$0xf]  ;;  %v1645_v61 = vld [vmem:[#allocation11 + $0xd0] sm:$0xf] }
  0x4f   :  { %592 = vmatpush.bf16.msrb.mxu0 %v1436_v33  ;;  %v1661_v33 = vld [vmem:[#allocation11 + $0xf0] sm:$0xf]  ;;  %v2259_v50 = vor.u32 %v1888_v48, %v1653_v47  ;;  %v1868_v54 = vld [vmem:[#allocation11 + $0x44] sm:$0xf0]  ;;  %v1867_v55 = vld [vmem:[#allocation11 + $0x44] sm:$0xf] }
  0x50   :  { %605 = vmatpush.bf16.msrb.mxu1 %v1500_v36  ;;  %618 = vmatpush.bf16.msrb.mxu2 %v1440_v37  ;;  %v2243_v36 = vor.u32 %v1890_v34, %v1661_v33  ;;  %v1663_v37 = vld [vmem:[#allocation11 + $0xf8] sm:$0xf0]  ;;  %v1886_v62 = vld [vmem:[#allocation11 + $0xd4] sm:$0xf0]  ;;  %v1885_v63 = vld [vmem:[#allocation11 + $0xd4] sm:$0xf] }
  0x51   :  { %631 = vmatpush.bf16.msrb.mxu3 %v1504_v42  ;;  %v2248_v39 = vor.u32 %v1889_v35, %v1663_v37  ;;  %v1869_v42 = vld [vmem:[#allocation11 + $0x54] sm:$0xf]  ;;  %v2275_v0 = vor.u32 %v1886_v62, %v1645_v61  ;;  %v1565_v4 = vld [vmem:[#allocation11 + $0x30] sm:$0xf]  ;;  %v1866_v5 = vld [vmem:[#allocation11 + $0x34] sm:$0xf0] }
  0x52   :  { %v2256_v46 = vor.u32 %v1869_v42, %v1583_v45  ;;  %v1865_v6 = vld [vmem:[#allocation11 + $0x34] sm:$0xf]  ;;  %v2281_v8 = vor.u32 %v1866_v5, %v1565_v4  ;;  %v1567_v9 = vld [vmem:[#allocation11 + $0x38] sm:$0xf0]  ;;  %v1637_v11 = vld [vmem:[#allocation11 + $0xc0] sm:$0xf] }
  0x53   :  { %593 = vmatpush.bf16.msrb.mxu0 %v1428_v51  ;;  %v1655_v51 = vld [vmem:[#allocation11 + $0xe8] sm:$0xf0]  ;;  %v2284_v10 = vor.u32 %v1865_v6, %v1567_v9  ;;  %v1884_v12 = vld [vmem:[#allocation11 + $0xc4] sm:$0xf0]  ;;  %v1557_v17 = vld [vmem:[#allocation11 + $0x20] sm:$0xf] }
  0x54   :  { %606 = vmatpush.bf16.msrb.mxu1 %v1492_v52  ;;  %619 = vmatpush.bf16.msrb.mxu2 %v1432_v53  ;;  %v2262_v52 = vor.u32 %v1887_v49, %v1655_v51  ;;  %v1573_v53 = vld [vmem:[#allocation11 + $0x40] sm:$0xf]  ;;  %v2287_v14 = vor.u32 %v1884_v12, %v1637_v11  ;;  %v1559_v22 = vld [vmem:[#allocation11 + $0x28] sm:$0xf0]  ;;  %v1629_v27 = vld [vmem:[#allocation11 + $0xb0] sm:$0xf] }
  0x55   :  { %632 = vmatpush.bf16.msrb.mxu3 %v1496_v58  ;;  %v2267_v57 = vor.u32 %v1868_v54, %v1573_v53  ;;  %v1575_v58 = vld [vmem:[#allocation11 + $0x48] sm:$0xf0]  ;;  %v1882_v28 = vld [vmem:[#allocation11 + $0xb4] sm:$0xf0]  ;;  %v1881_v29 = vld [vmem:[#allocation11 + $0xb4] sm:$0xf] }
  0x56   :  { %v2272_v60 = vor.u32 %v1867_v55, %v1575_v58  ;;  %v2299_v31 = vor.u32 %v1882_v28, %v1629_v27  ;;  %v1631_v33 = vld [vmem:[#allocation11 + $0xb8] sm:$0xf0]  ;;  %v1549_v35 = vld [vmem:[#allocation11 + $0x10] sm:$0xf]  ;;  %v1862_v37 = vld [vmem:[#allocation11 + $0x14] sm:$0xf0]  ;;  %v2369_v28 = vstv %s640_s4 }
  0x57   :  { %594 = vmatpush.bf16.msrb.mxu0 %v1420_v1  ;;  %v1647_v1 = vld [vmem:[#allocation11 + $0xd8] sm:$0xf0]  ;;  %v2302_v34 = vor.u32 %v1881_v29, %v1631_v33  ;;  %v1861_v40 = vld [vmem:[#allocation11 + $0x14] sm:$0xf]  ;;  %v2305_v41 = vor.u32 %v1862_v37, %v1549_v35  ;;  %v1621_v47 = vld [vmem:[#allocation11 + $0xa0] sm:$0xf] }
  0x58   :  { %607 = vmatpush.bf16.msrb.mxu1 %v1484_v2  ;;  %620 = vmatpush.bf16.msrb.mxu2 %v1424_v3  ;;  %v2278_v3 = vor.u32 %v1885_v63, %v1647_v1  ;;  %v1551_v42 = vld [vmem:[#allocation11 + $0x18] sm:$0xf0]  ;;  %v1880_v48 = vld [vmem:[#allocation11 + $0xa4] sm:$0xf0]  ;;  %v1879_v49 = vld [vmem:[#allocation11 + $0xa4] sm:$0xf] }
  0x59   :  { %633 = vmatpush.bf16.msrb.mxu3 %v1488_v7  ;;  %v2308_v45 = vor.u32 %v1861_v40, %v1551_v42  ;;  %v2311_v51 = vor.u32 %v1880_v48, %v1621_v47  ;;  %v1623_v53 = vld [vmem:[#allocation11 + $0xa8] sm:$0xf0]  ;;  %v1541_v55 = vld [vmem:[#allocation11] sm:$0xf]  ;;  %v1860_v58 = vld [vmem:[#allocation11 + $0x4] sm:$0xf0] }
  0x5a   :  { %v2314_v54 = vor.u32 %v1879_v49, %v1623_v53  ;;  %v1859_v61 = vld [vmem:[#allocation11 + $0x4] sm:$0xf]  ;;  %v2317_v62 = vor.u32 %v1860_v58, %v1541_v55  ;;  %v1543_v63 = vld [vmem:[#allocation11 + $0x8] sm:$0xf0]  ;;  %v1878_v4 = vld [vmem:[#allocation11 + $0x94] sm:$0xf0] }
  0x5b   :  { %595 = vmatpush.bf16.msrb.mxu0 %v1412_v13  ;;  %v1883_v13 = vld [vmem:[#allocation11 + $0xc4] sm:$0xf]  ;;  %v2320_v1 = vor.u32 %v1859_v61, %v1543_v63  ;;  %v1877_v5 = vld [vmem:[#allocation11 + $0x94] sm:$0xf]  ;;  %v1605_v11 = vld [vmem:[#allocation11 + $0x80] sm:$0xf] }
  0x5c   :  { %608 = vmatpush.bf16.msrb.mxu1 %v1476_v15  ;;  %621 = vmatpush.bf16.msrb.mxu2 %v1416_v16  ;;  %v1639_v15 = vld [vmem:[#allocation11 + $0xc8] sm:$0xf0]  ;;  %v1876_v12 = vld [vmem:[#allocation11 + $0x84] sm:$0xf0]  ;;  %s1268_s23 = sshll.u32 %s2425_s8, 4  ;;  %s1269_s23 = int_to_ptr.hbm [resolvable:$true] %s1268_s23 }
  0x5d   :  { %634 = vmatpush.bf16.msrb.mxu3 %v1480_v18  ;;  %v2290_v16 = vor.u32 %v1883_v13, %v1639_v15  ;;  %v1864_v18 = vld [vmem:[#allocation11 + $0x24] sm:$0xf0]  ;;  %v1875_v13 = vld [vmem:[#allocation11 + $0x84] sm:$0xf]  ;;  %v2332_v15 = vor.u32 %v1876_v12, %v1605_v11 }
  0x5e   :  { %596 = vmatmul.bf16.vlgmr.msrb.gmra.mxu0 %v392_v19  ;;  %v2293_v21 = vor.u32 %v1864_v18, %v1557_v17  ;;  %v1607_v17 = vld [vmem:[#allocation11 + $0x88] sm:$0xf0] }
  0x5f   :  { %609 = vmatmul.bf16.vlgmr.msrb.gmra.mxu1 %v393_v20  ;;  %622 = vmatmul.bf16.vlgmr.msrb.gmra.mxu2 %v392_v19  ;;  %v1863_v19 = vld [vmem:[#allocation11 + $0x24] sm:$0xf] }
  0x60   :  { %635 = vmatmul.bf16.vlgmr.msrb.gmra.mxu3 %v393_v20  ;;  %863 = vmatpush.bf16.msra.mxu0 %v2232_v24  ;;  %v2296_v25 = vor.u32 %v1863_v19, %v1559_v22  ;;  %v2338_v19 = vor.u32 %v1875_v13, %v1607_v17 }
  0x61   :  { %889 = vmatpush.bf16.msra.mxu2 %v2234_v26  ;;  %876 = vmatpush.bf16.msra.mxu1 %v2243_v36 }
  0x62   :  { %902 = vmatpush.bf16.msra.mxu3 %v2248_v39 }
  0x64   :  { %864 = vmatpush.bf16.msra.mxu0 %v2238_v30 }
  0x65   :  { %890 = vmatpush.bf16.msra.mxu2 %v2240_v32  ;;  %877 = vmatpush.bf16.msra.mxu1 %v2259_v50 }
  0x66   :  { %903 = vmatpush.bf16.msra.mxu3 %v2262_v52 }
  0x68   :  { %865 = vmatpush.bf16.msra.mxu0 %v2253_v44 }
  0x69   :  { %891 = vmatpush.bf16.msra.mxu2 %v2256_v46  ;;  %878 = vmatpush.bf16.msra.mxu1 %v2275_v0 }
  0x6a   :  { %904 = vmatpush.bf16.msra.mxu3 %v2278_v3 }
  0x6c   :  { %866 = vmatpush.bf16.msra.mxu0 %v2267_v57 }
  0x6d   :  { %892 = vmatpush.bf16.msra.mxu2 %v2272_v60  ;;  %879 = vmatpush.bf16.msra.mxu1 %v2287_v14 }
  0x6e   :  { %905 = vmatpush.bf16.msra.mxu3 %v2290_v16 }
  0x70   :  { %867 = vmatpush.bf16.msra.mxu0 %v2281_v8 }
  0x71   :  { %893 = vmatpush.bf16.msra.mxu2 %v2284_v10  ;;  %880 = vmatpush.bf16.msra.mxu1 %v2299_v31 }
  0x72   :  { %906 = vmatpush.bf16.msra.mxu3 %v2302_v34 }
  0x74   :  { %868 = vmatpush.bf16.msra.mxu0 %v2293_v21 }
  0x75   :  { %894 = vmatpush.bf16.msra.mxu2 %v2296_v25  ;;  %881 = vmatpush.bf16.msra.mxu1 %v2311_v51 }
  0x76   :  { %907 = vmatpush.bf16.msra.mxu3 %v2314_v54 }
  0x78   :  { %869 = vmatpush.bf16.msra.mxu0 %v2305_v41 }
  0x79   :  { %895 = vmatpush.bf16.msra.mxu2 %v2308_v45  ;;  %s1924_s1 = spop %1923 }
  0x7a   :  { %s139_s2 = smul.f32 -1.0, %s1924_s1 }
  0x7c   :  { %870 = vmatpush.bf16.msra.mxu0 %v2317_v62 }
  0x7d   :  { %896 = vmatpush.bf16.msra.mxu2 %v2320_v1 }
  0x80   :  { %939 = vmatpush.bf16.msrb.mxu0 %v2232_v24 }
  0x81   :  { %965 = vmatpush.bf16.msrb.mxu2 %v2234_v26 }
  0x84   :  { %940 = vmatpush.bf16.msrb.mxu0 %v2238_v30 }
  0x85   :  { %966 = vmatpush.bf16.msrb.mxu2 %v2240_v32 }
  0x88   :  { %941 = vmatpush.bf16.msrb.mxu0 %v2253_v44 }
  0x89   :  { %967 = vmatpush.bf16.msrb.mxu2 %v2256_v46 }
  0x8c   :  { %942 = vmatpush.bf16.msrb.mxu0 %v2267_v57 }
  0x8d   :  { %968 = vmatpush.bf16.msrb.mxu2 %v2272_v60 }
  0x90   :  { %943 = vmatpush.bf16.msrb.mxu0 %v2281_v8 }
  0x91   :  { %969 = vmatpush.bf16.msrb.mxu2 %v2284_v10  ;;  %v2375_v10 = vstv %s1538_s6 }
  0x94   :  { %944 = vmatpush.bf16.msrb.mxu0 %v2293_v21 }
  0x95   :  { %970 = vmatpush.bf16.msrb.mxu2 %v2296_v25 }
  0x98   :  { %945 = vmatpush.bf16.msrb.mxu0 %v2305_v41 }
  0x99   :  { %971 = vmatpush.bf16.msrb.mxu2 %v2308_v45 }
  0x9c   :  { %946 = vmatpush.bf16.msrb.mxu0 %v2317_v62 }
  0x9d   :  { %972 = vmatpush.bf16.msrb.mxu2 %v2320_v1 }
  0xbb   :  { %v2245_v38 = vpop.f32.mrf.mxu0 }
  0xbe   :  { %v2250_v43 = vpop.f32.mrf.mxu1 }
  0xbf   :  { %v2336_v18 = vadd.f32 %v2250_v43, %v2245_v38  ;;  %v2347_v38 = vstv %s139_s2 }
  0xc2   :  { %v2264_v56 = vpop.f32.mrf.mxu2 }
  0xc3   :  { %v347_v2 = vpop.f32.mrf.mxu0 }
  0xc4   :  { %v1613_v2 = vld [vmem:[#allocation11 + $0x90] sm:$0xf] }
  0xc5   :  { %v2269_v59 = vpop.f32.mrf.mxu3  ;;  %v2323_v6 = vor.u32 %v1878_v4, %v1613_v2 }
  0xc6   :  { %v360_v7 = vpop.f32.mrf.mxu1  ;;  %v2353_v30 = vadd.f32 %v2269_v59, %v2264_v56 }
  0xc7   :  { %v1615_v7 = vld [vmem:[#allocation11 + $0x98] sm:$0xf0]  ;;  %882 = vmatpush.bf16.msra.mxu1 %v2323_v6 }
  0xc8   :  { %v2326_v9 = vor.u32 %v1877_v5, %v1615_v7 }
  0xca   :  { %v373_v20 = vpop.f32.mrf.mxu2  ;;  %908 = vmatpush.bf16.msra.mxu3 %v2326_v9 }
  0xcb   :  { %883 = vmatpush.bf16.msra.mxu1 %v2332_v15 }
  0xcd   :  { %v386_v23 = vpop.f32.mrf.mxu3 }
  0xce   :  { %909 = vmatpush.bf16.msra.mxu3 %v2338_v19 }
  0xcf   :  { %952 = vmatpush.bf16.msrb.mxu1 %v2243_v36 }
  0xd2   :  { %978 = vmatpush.bf16.msrb.mxu3 %v2248_v39 }
  0xd3   :  { %953 = vmatpush.bf16.msrb.mxu1 %v2259_v50 }
  0xd6   :  { %979 = vmatpush.bf16.msrb.mxu3 %v2262_v52 }
  0xd7   :  { %954 = vmatpush.bf16.msrb.mxu1 %v2275_v0 }
  0xda   :  { %980 = vmatpush.bf16.msrb.mxu3 %v2278_v3  ;;  %v2371_v3 = vstv %s1537_s18 }
  0xdb   :  { %v597_v24 = vpop.f32.mrf.mxu0  ;;  %955 = vmatpush.bf16.msrb.mxu1 %v2287_v14 }
  0xdc   :  { %v598_v20 = vadd.f32 %v597_v24, %v2336_v18  ;;  %v610_v22 = vpop.f32.mrf.mxu1 }
  0xde   :  { %v611_v26 = vadd.f32 %v610_v22, %v598_v20  ;;  %981 = vmatpush.bf16.msrb.mxu3 %v2290_v16 }
  0xdf   :  { %956 = vmatpush.bf16.msrb.mxu1 %v2299_v31 }
  0xe0   :  { %v644_v43 = vmul.f32 %v611_v26, %v611_v26  ;;  %v642_v14 = vmul.f32 %v2369_v28, %v611_v26 }
  0xe2   :  { %v647_v32 = vmul.f32 %v2347_v38, %v644_v43  ;;  %v623_v23 = vpop.f32.mrf.mxu2  ;;  %982 = vmatpush.bf16.msrb.mxu3 %v2302_v34 }
  0xe3   :  { %v624_v36 = vadd.f32 %v623_v23, %v2353_v30  ;;  %v636_v39 = vpop.f32.mrf.mxu3  ;;  %v599_v27 = vpop.f32.mrf.mxu0  ;;  %957 = vmatpush.bf16.msrb.mxu1 %v2311_v51 }
  0xe4   :  { %v649_v44 = vmul.f32 1.442695, %v647_v32  ;;  %v612_v46 = vpop.f32.mrf.mxu1 }
  0xe5   :  { %v637_v56 = vadd.f32 %v636_v39, %v624_v36 }
  0xe6   :  { %1936 = vpow2.f32 %v649_v44  ;;  %983 = vmatpush.bf16.msrb.mxu3 %v2314_v54 }
  0xe7   :  { %v645_v50 = vmul.f32 %v637_v56, %v637_v56  ;;  %958 = vmatpush.bf16.msrb.mxu1 %v2323_v6  ;;  %v643_v37 = vmul.f32 %v2369_v28, %v637_v56 }
  0xe9   :  { %v648_v52 = vmul.f32 %v2347_v38, %v645_v50 }
  0xea   :  { %v625_v57 = vpop.f32.mrf.mxu2  ;;  %984 = vmatpush.bf16.msrb.mxu3 %v2326_v9 }
  0xeb   :  { %v651_v59 = vmul.f32 1.442695, %v648_v52  ;;  %v638_v60 = vpop.f32.mrf.mxu3  ;;  %959 = vmatpush.bf16.msrb.mxu1 %v2332_v15  ;;  %v1725_v52 = vld [vmem:[#allocation12 + $0x70] sm:$0xf]  ;;  %v1906_v57 = vld [vmem:[#allocation12 + $0x74] sm:$0xf0] }
  0xec   :  { %v1937_v0 = vpop.eup %1936  ;;  %v1726_v60 = vor.u32 %v1906_v57, %v1725_v52  ;;  %v1687_v52 = vld [vmem:[#allocation12 + $0x28] sm:$0xf0] }
  0xed   :  { %1938 = vpow2.f32 %v651_v59  ;;  %v653_v8 = vmul.f32 %v1937_v0, %v611_v26  ;;  %v1905_v59 = vld [vmem:[#allocation12 + $0x74] sm:$0xf] }
  0xee   :  { %985 = vmatpush.bf16.msrb.mxu3 %v2338_v19 }
  0xef   :  { %v657_v16 = vmul.f32 %v2371_v3, %v653_v8  ;;  %v661_v21 = vmul.f32 %v1937_v0, %v653_v8  ;;  %v1727_v0 = vld [vmem:[#allocation12 + $0x78] sm:$0xf0] }
  0xf0   :  { %v1730_v8 = vor.u32 %v1905_v59, %v1727_v0  ;;  %v1757_v59 = vld [vmem:[#allocation12 + $0xb0] sm:$0xf]  ;;  %v1913_v0 = vld [vmem:[#allocation12 + $0xb4] sm:$0xf] }
  0xf1   :  { %v659_v29 = vadd.f32 %v657_v16, %v642_v14  ;;  %v665_v25 = vmul.f32 %v2375_v10, %v661_v21  ;;  %v1717_v14 = vld [vmem:[#allocation12 + $0x60] sm:$0xf]  ;;  %v1904_v16 = vld [vmem:[#allocation12 + $0x64] sm:$0xf0]  ;;  %v1903_v21 = vld [vmem:[#allocation12 + $0x64] sm:$0xf] }
  0xf3   :  { %v1939_v31 = vpop.eup %1938  ;;  %v667_v33 = vadd.f32 %v665_v25, %v659_v29  ;;  %v1718_v29 = vor.u32 %v1904_v16, %v1717_v14  ;;  %v1719_v25 = vld [vmem:[#allocation12 + $0x68] sm:$0xf0]  ;;  %v1759_v14 = vld [vmem:[#allocation12 + $0xb8] sm:$0xf0] }
  0xf4   :  { %v654_v34 = vmul.f32 %v1939_v31, %v637_v56  ;;  %v1762_v16 = vor.u32 %v1913_v0, %v1759_v14 }
  0xf5   :  { %v669_v35 = vpack.c.bf16 %v667_v33, %v667_v33  ;;  %v1789_v33 = vld [vmem:[#allocation12 + $0xf0] sm:$0xf] }
  0xf6   :  { %v658_v40 = vmul.f32 %v2371_v3, %v654_v34  ;;  %v662_v41 = vmul.f32 %v1939_v31, %v654_v34  ;;  %v1722_v31 = vor.u32 %v1903_v21, %v1719_v25  ;;  %v1922_v34 = vld [vmem:[#allocation12 + $0xf4] sm:$0xf0]  ;;  %v1677_v21 = vld [vmem:[#allocation12 + $0x10] sm:$0xf]  ;;  %v1893_v25 = vld [vmem:[#allocation12 + $0x14] sm:$0xf] }
  0xf7   :  { %871 = vmatmul.bf16.vlgmr.msra.gmra.mxu0 %v669_v35  ;;  %897 = vmatmul.bf16.vlgmr.msra.gmra.mxu2 %v669_v35  ;;  %v1921_v35 = vld [vmem:[#allocation12 + $0xf4] sm:$0xf] }
  0xf8   :  { %v660_v42 = vadd.f32 %v658_v40, %v643_v37  ;;  %v666_v45 = vmul.f32 %v2375_v10, %v662_v41  ;;  %1207 = vmatpush.bf16.msra.mxu0 %v1726_v60  ;;  %1233 = vmatpush.bf16.msra.mxu2 %v1730_v8  ;;  %v1790_v37 = vor.u32 %v1922_v34, %v1789_v33  ;;  %v1791_v40 = vld [vmem:[#allocation12 + $0xf8] sm:$0xf0]  ;;  %v1914_v60 = vld [vmem:[#allocation12 + $0xb4] sm:$0xf0] }
  0xf9   :  { %v1794_v41 = vor.u32 %v1921_v35, %v1791_v40  ;;  %v1758_v8 = vor.u32 %v1914_v60, %v1757_v59  ;;  %v1679_v33 = vld [vmem:[#allocation12 + $0x18] sm:$0xf0]  ;;  %v1749_v35 = vld [vmem:[#allocation12 + $0xa0] sm:$0xf]  ;;  %v1911_v40 = vld [vmem:[#allocation12 + $0xa4] sm:$0xf] }
  0xfa   :  { %v668_v47 = vadd.f32 %v666_v45, %v660_v42  ;;  %v1709_v42 = vld [vmem:[#allocation12 + $0x50] sm:$0xf]  ;;  %v1902_v45 = vld [vmem:[#allocation12 + $0x54] sm:$0xf0]  ;;  %v1682_v34 = vor.u32 %v1893_v25, %v1679_v33 }
  0xfc   :  { %v670_v48 = vpack.c.bf16 %v668_v47, %v668_v47  ;;  %1208 = vmatpush.bf16.msra.mxu0 %v1718_v29  ;;  %1234 = vmatpush.bf16.msra.mxu2 %v1722_v31  ;;  %v1901_v47 = vld [vmem:[#allocation12 + $0x54] sm:$0xf]  ;;  %v1894_v29 = vld [vmem:[#allocation12 + $0x14] sm:$0xf0] }
  0xfd   :  { %v1678_v31 = vor.u32 %v1894_v29, %v1677_v21 }
  0xfe   :  { %884 = vmatmul.bf16.vlgmr.msra.gmra.mxu1 %v670_v48  ;;  %910 = vmatmul.bf16.vlgmr.msra.gmra.mxu3 %v670_v48  ;;  %v1710_v48 = vor.u32 %v1902_v45, %v1709_v42  ;;  %v1751_v42 = vld [vmem:[#allocation12 + $0xa8] sm:$0xf0] }
  0xff   :  { %1220 = vmatpush.bf16.msra.mxu1 %v1790_v37  ;;  %1246 = vmatpush.bf16.msra.mxu3 %v1794_v41  ;;  %v1912_v37 = vld [vmem:[#allocation12 + $0xa4] sm:$0xf0]  ;;  %v1754_v45 = vor.u32 %v1911_v40, %v1751_v42 }
 0x100   :  { %1209 = vmatpush.bf16.msra.mxu0 %v1710_v48  ;;  %v1750_v41 = vor.u32 %v1912_v37, %v1749_v35  ;;  %v1892_v48 = vld [vmem:[#allocation12 + $0x4] sm:$0xf0] }
 0x174   :  { %v872_v49 = vpop.f32.mrf.mxu0 }
 0x175   :  { %v873_v51 = vadd.f32 %v872_v49, %v2336_v18  ;;  %v1711_v49 = vld [vmem:[#allocation12 + $0x58] sm:$0xf0] }
 0x17a   :  { %v898_v53 = vpop.f32.mrf.mxu2 }
 0x17b   :  { %v885_v54 = vpop.f32.mrf.mxu1  ;;  %v899_v63 = vadd.f32 %v898_v53, %v2353_v30  ;;  %v1781_v53 = vld [vmem:[#allocation12 + $0xe0] sm:$0xf] }
 0x17c   :  { %v886_v55 = vadd.f32 %v885_v54, %v873_v51  ;;  %v874_v58 = vpop.f32.mrf.mxu0  ;;  %v1714_v51 = vor.u32 %v1901_v47, %v1711_v49  ;;  %v1920_v54 = vld [vmem:[#allocation12 + $0xe4] sm:$0xf0]  ;;  %v1669_v47 = vld [vmem:[#allocation12] sm:$0xf]  ;;  %v1891_v49 = vld [vmem:[#allocation12 + $0x4] sm:$0xf] }
 0x17d   :  { %v1782_v58 = vor.u32 %v1920_v54, %v1781_v53  ;;  %v1671_v53 = vld [vmem:[#allocation12 + $0x8] sm:$0xf0] }
 0x17e   :  { %v917_v61 = vmul.f32 %v886_v55, %v886_v55  ;;  %v915_v17 = vmul.f32 %v886_v55, %v2369_v28  ;;  %1235 = vmatpush.bf16.msra.mxu2 %v1714_v51  ;;  %v1670_v51 = vor.u32 %v1892_v48, %v1669_v47  ;;  %v1674_v54 = vor.u32 %v1891_v49, %v1671_v53 }
 0x17f   :  { %1221 = vmatpush.bf16.msra.mxu1 %v1782_v58  ;;  %v1910_v58 = vld [vmem:[#allocation12 + $0x94] sm:$0xf0] }
 0x180   :  { %v919_v62 = vmul.f32 %v917_v61, %v2347_v38  ;;  %v1783_v61 = vld [vmem:[#allocation12 + $0xe8] sm:$0xf0] }
 0x181   :  { %v911_v1 = vpop.f32.mrf.mxu3 }
 0x182   :  { %v921_v2 = vmul.f32 1.442695, %v919_v62  ;;  %v912_v4 = vadd.f32 %v911_v1, %v899_v63  ;;  %v900_v5 = vpop.f32.mrf.mxu2  ;;  %v1701_v63 = vld [vmem:[#allocation12 + $0x40] sm:$0xf]  ;;  %v1900_v1 = vld [vmem:[#allocation12 + $0x44] sm:$0xf0] }
 0x183   :  { %v887_v6 = vpop.f32.mrf.mxu1  ;;  %v1703_v5 = vld [vmem:[#allocation12 + $0x48] sm:$0xf0] }
 0x184   :  { %1940 = vpow2.f32 %v921_v2  ;;  %v918_v7 = vmul.f32 %v912_v4, %v912_v4  ;;  %v916_v23 = vmul.f32 %v912_v4, %v2369_v28  ;;  %v1899_v2 = vld [vmem:[#allocation12 + $0x44] sm:$0xf] }
 0x185   :  { %v1706_v6 = vor.u32 %v1899_v2, %v1703_v5  ;;  %v1908_v5 = vld [vmem:[#allocation12 + $0x84] sm:$0xf0] }
 0x186   :  { %v920_v9 = vmul.f32 %v918_v7, %v2347_v38  ;;  %v1773_v7 = vld [vmem:[#allocation12 + $0xd0] sm:$0xf] }
 0x187   :  { %1236 = vmatpush.bf16.msra.mxu2 %v1706_v6  ;;  %v1907_v6 = vld [vmem:[#allocation12 + $0x84] sm:$0xf] }
 0x188   :  { %v923_v11 = vmul.f32 1.442695, %v920_v9  ;;  %v1918_v9 = vld [vmem:[#allocation12 + $0xd4] sm:$0xf0] }
 0x189   :  { %v913_v12 = vpop.f32.mrf.mxu3 }
 0x18a   :  { %v1941_v13 = vpop.eup %1940  ;;  %1942 = vpow2.f32 %v923_v11  ;;  %v1917_v11 = vld [vmem:[#allocation12 + $0xd4] sm:$0xf]  ;;  %v1774_v12 = vor.u32 %v1918_v9, %v1773_v7  ;;  %v1735_v9 = vld [vmem:[#allocation12 + $0x88] sm:$0xf0] }
 0x18b   :  { %v925_v15 = vmul.f32 %v1941_v13, %v886_v55  ;;  %v1919_v55 = vld [vmem:[#allocation12 + $0xe4] sm:$0xf] }
 0x18c   :  { %v1786_v62 = vor.u32 %v1919_v55, %v1783_v61  ;;  %1222 = vmatpush.bf16.msra.mxu1 %v1774_v12  ;;  %v1741_v55 = vld [vmem:[#allocation12 + $0x90] sm:$0xf]  ;;  %v1909_v61 = vld [vmem:[#allocation12 + $0x94] sm:$0xf] }
 0x18d   :  { %v927_v19 = vmul.f32 %v925_v15, %v2371_v3  ;;  %v931_v24 = vmul.f32 %v1941_v13, %v925_v15  ;;  %v1775_v13 = vld [vmem:[#allocation12 + $0xd8] sm:$0xf0] }
 0x18e   :  { %1247 = vmatpush.bf16.msra.mxu3 %v1786_v62  ;;  %v1778_v15 = vor.u32 %v1917_v11, %v1775_v13  ;;  %v1742_v62 = vor.u32 %v1910_v58, %v1741_v55  ;;  %v1738_v11 = vor.u32 %v1907_v6, %v1735_v9 }
 0x18f   :  { %v929_v20 = vadd.f32 %v927_v19, %v915_v17  ;;  %v933_v22 = vmul.f32 %v931_v24, %v2375_v10  ;;  %v1693_v17 = vld [vmem:[#allocation12 + $0x30] sm:$0xf]  ;;  %v1898_v19 = vld [vmem:[#allocation12 + $0x34] sm:$0xf0]  ;;  %v1897_v24 = vld [vmem:[#allocation12 + $0x34] sm:$0xf] }
 0x190   :  { %v1943_v26 = vpop.eup %1942 }
 0x191   :  { %v926_v43 = vmul.f32 %v1943_v26, %v912_v4  ;;  %v935_v32 = vadd.f32 %v933_v22, %v929_v20  ;;  %v1702_v4 = vor.u32 %v1900_v1, %v1701_v63  ;;  %v1694_v20 = vor.u32 %v1898_v19, %v1693_v17  ;;  %v1695_v22 = vld [vmem:[#allocation12 + $0x38] sm:$0xf0] }
 0x192   :  { %1248 = vmatpush.bf16.msra.mxu3 %v1778_v15  ;;  %v1743_v63 = vld [vmem:[#allocation12 + $0x98] sm:$0xf0] }
 0x193   :  { %v928_v36 = vmul.f32 %v926_v43, %v2371_v3  ;;  %v932_v39 = vmul.f32 %v1943_v26, %v926_v43  ;;  %v937_v27 = vpack.c.bf16 %v935_v32, %v935_v32  ;;  %1210 = vmatpush.bf16.msra.mxu0 %v1702_v4  ;;  %v1698_v26 = vor.u32 %v1897_v24, %v1695_v22  ;;  %v1765_v43 = vld [vmem:[#allocation12 + $0xc0] sm:$0xf]  ;;  %v1916_v32 = vld [vmem:[#allocation12 + $0xc4] sm:$0xf0] }
 0x194   :  { %v1746_v1 = vor.u32 %v1909_v61, %v1743_v63  ;;  %v1733_v4 = vld [vmem:[#allocation12 + $0x80] sm:$0xf] }
 0x195   :  { %v930_v44 = vadd.f32 %v928_v36, %v916_v23  ;;  %v934_v46 = vmul.f32 %v932_v39, %v2375_v10  ;;  %947 = vmatmul.bf16.vlgmr.msrb.gmra.mxu0 %v937_v27  ;;  %973 = vmatmul.bf16.vlgmr.msrb.gmra.mxu2 %v937_v27  ;;  %v1915_v23 = vld [vmem:[#allocation12 + $0xc4] sm:$0xf]  ;;  %v1766_v36 = vor.u32 %v1916_v32, %v1765_v43  ;;  %v1767_v39 = vld [vmem:[#allocation12 + $0xc8] sm:$0xf0] }
 0x196   :  { %1237 = vmatpush.bf16.msra.mxu2 %v1698_v26  ;;  %v1770_v27 = vor.u32 %v1915_v23, %v1767_v39  ;;  %v1734_v7 = vor.u32 %v1908_v5, %v1733_v4 }
 0x197   :  { %v936_v56 = vadd.f32 %v934_v46, %v930_v44  ;;  %1211 = vmatpush.bf16.msra.mxu0 %v1694_v20  ;;  %v1685_v44 = vld [vmem:[#allocation12 + $0x20] sm:$0xf]  ;;  %v1896_v46 = vld [vmem:[#allocation12 + $0x24] sm:$0xf0]  ;;  %1223 = vmatpush.bf16.msra.mxu1 %v1766_v36 }
 0x198   :  { %1249 = vmatpush.bf16.msra.mxu3 %v1770_v27 }
 0x199   :  { %v938_v50 = vpack.c.bf16 %v936_v56, %v936_v56  ;;  %v1895_v56 = vld [vmem:[#allocation12 + $0x24] sm:$0xf] }
 0x19a   :  { %v1690_v57 = vor.u32 %v1895_v56, %v1687_v52 }
 0x19b   :  { %960 = vmatmul.bf16.vlgmr.msrb.gmra.mxu1 %v938_v50  ;;  %986 = vmatmul.bf16.vlgmr.msrb.gmra.mxu3 %v938_v50  ;;  %v1686_v50 = vor.u32 %v1896_v46, %v1685_v44 }
 0x19c   :  { %1238 = vmatpush.bf16.msra.mxu2 %v1690_v57  ;;  %1224 = vmatpush.bf16.msra.mxu1 %v1758_v8 }
 0x19d   :  { %1212 = vmatpush.bf16.msra.mxu0 %v1686_v50  ;;  %1250 = vmatpush.bf16.msra.mxu3 %v1762_v16 }
 0x1a0   :  { %1239 = vmatpush.bf16.msra.mxu2 %v1682_v34  ;;  %1225 = vmatpush.bf16.msra.mxu1 %v1750_v41 }
 0x1a1   :  { %1213 = vmatpush.bf16.msra.mxu0 %v1678_v31  ;;  %1251 = vmatpush.bf16.msra.mxu3 %v1754_v45 }
 0x1a4   :  { %1240 = vmatpush.bf16.msra.mxu2 %v1674_v54  ;;  %1226 = vmatpush.bf16.msra.mxu1 %v1742_v62 }
 0x1a5   :  { %1214 = vmatpush.bf16.msra.mxu0 %v1670_v51  ;;  %1252 = vmatpush.bf16.msra.mxu3 %v1746_v1 }
 0x1a8   :  { %1227 = vmatpush.bf16.msra.mxu1 %v1734_v7 }
 0x1a9   :  { %1253 = vmatpush.bf16.msra.mxu3 %v1738_v11 }
 0x212   :  { %v948_v2 = vpop.f32.mrf.mxu0 }
 0x213   :  { %v949_v12 = vadd.f32 %v948_v2, %v2336_v18 }
 0x218   :  { %v961_v13 = vpop.f32.mrf.mxu1  ;;  %v974_v15 = vpop.f32.mrf.mxu2 }
 0x219   :  { %v962_v17 = vadd.f32 %v961_v13, %v949_v12  ;;  %v975_v22 = vadd.f32 %v974_v15, %v2353_v30 }
 0x21a   :  { %v950_v19 = vpop.f32.mrf.mxu0 }
 0x21b   :  { %v993_v24 = vmul.f32 %v962_v17, %v962_v17  ;;  %v991_v50 = vmul.f32 %v962_v17, %v2369_v28 }
 0x21d   :  { %v995_v20 = vmul.f32 %v993_v24, %v2347_v38 }
 0x21e   :  { %v987_v26 = vpop.f32.mrf.mxu3 }
 0x21f   :  { %v997_v43 = vmul.f32 1.442695, %v995_v20  ;;  %v988_v32 = vadd.f32 %v987_v26, %v975_v22 }
 0x220   :  { %v963_v23 = vpop.f32.mrf.mxu1  ;;  %v976_v36 = vpop.f32.mrf.mxu2 }
 0x221   :  { %1944 = vpow2.f32 %v997_v43  ;;  %v994_v39 = vmul.f32 %v988_v32, %v988_v32  ;;  %v992_v14 = vmul.f32 %v988_v32, %v2369_v28 }
 0x223   :  { %v996_v27 = vmul.f32 %v994_v39, %v2347_v38 }
 0x225   :  { %v999_v18 = vmul.f32 1.442695, %v996_v27 }
 0x226   :  { %v989_v44 = vpop.f32.mrf.mxu3 }
 0x227   :  { %v1945_v46 = vpop.eup %1944  ;;  %1946 = vpow2.f32 %v999_v18 }
 0x228   :  { %v1001_v56 = vmul.f32 %v1945_v46, %v962_v17 }
 0x22a   :  { %v1003_v52 = vmul.f32 %v1001_v56, %v2371_v3  ;;  %v1007_v57 = vmul.f32 %v1945_v46, %v1001_v56 }
 0x22c   :  { %v1005_v30 = vadd.f32 %v1003_v52, %v991_v50  ;;  %v1009_v59 = vmul.f32 %v1007_v57, %v2375_v10 }
 0x22d   :  { %v1947_v60 = vpop.eup %1946 }
 0x22e   :  { %v1002_v0 = vmul.f32 %v1947_v60, %v988_v32  ;;  %v1011_v8 = vadd.f32 %v1009_v59, %v1005_v30 }
 0x230   :  { %v1004_v38 = vmul.f32 %v1002_v0, %v2371_v3  ;;  %v1008_v16 = vmul.f32 %v1947_v60, %v1002_v0  ;;  %v1013_v21 = vpack.c.bf16 %v1011_v8, %v1011_v8 }
 0x232   :  { %v1006_v29 = vadd.f32 %v1004_v38, %v992_v14  ;;  %v1010_v25 = vmul.f32 %v1008_v16, %v2375_v10  ;;  %1215 = vmatmul.bf16.vlgmr.msra.gmra.mxu0 %v1013_v21  ;;  %1241 = vmatmul.bf16.vlgmr.msra.gmra.mxu2 %v1013_v21 }
 0x234   :  { %v1012_v31 = vadd.f32 %v1010_v25, %v1006_v29 }
 0x236   :  { %v1014_v33 = vpack.c.bf16 %v1012_v31, %v1012_v31 }
 0x238   :  { %1228 = vmatmul.bf16.vlgmr.msra.gmra.mxu1 %v1014_v33  ;;  %1254 = vmatmul.bf16.vlgmr.msra.gmra.mxu3 %v1014_v33 }
 0x2af   :  { %v1216_v34 = vpop.f32.mrf.mxu0 }
 0x2b5   :  { %v1229_v35 = vpop.f32.mrf.mxu1  ;;  %v1242_v37 = vpop.f32.mrf.mxu2 }
 0x2b6   :  { %v1230_v40 = vadd.f32 %v1229_v35, %v1216_v34 }
 0x2b7   :  { %v1218_v41 = vpop.f32.mrf.mxu0 }
 0x2b8   :  { %1259 = vst [vmem:[#allocation15] sm:$0xff] %v1230_v40 }
 0x2bb   :  { %v1255_v28 = vpop.f32.mrf.mxu3 }
 0x2bc   :  { %v1256_v3 = vadd.f32 %v1255_v28, %v1242_v37 }
 0x2bd   :  { %v1231_v10 = vpop.f32.mrf.mxu1  ;;  %v1244_v42 = vpop.f32.mrf.mxu2 }
 0x2be   :  { %1260 = vst [vmem:[#allocation15 + $0x8] sm:$0xff] %v1256_v3 }
 0x2bf   :  { %1271 = dma.vmem_to_hbm [thread:$0]  %s1267_s20, 256, %s1269_s23, [#allocation6]  }
 0x2c3   :  { %v1257_v45 = vpop.f32.mrf.mxu3 }
 0x2c4   :  { %2112 = dma.done.wait [#allocation6], 256  }
 0x2c5   :  { %2113 = vsyncadd [#allocation6], 4294967040 }
 0x2c6   :  { %1276 = vsyncpa [#allocation5], 1 }
 0x2c7   :  { %1277 = vsyncpa [#allocation10], 1 }
 0x2c8   :  { %1278 = vsyncpa [#allocation13], 1 }
 0x2c9   :  { %1279 = vsyncpa [#allocation6], 1 }
 0x2ca   :  { %1280 = vsyncpa [#allocation7], 1 }

// kernel: tpu_custom_call.1
= control target key start
LH: loop header
LB: loop body
LE: loop exit
PB: predicated region body
PF: predicated region fallthrough
CT: control target
= control target key end

     0   :  { %14 = vsyncpa [#allocation7], 0  ;;  %s2417_s0 = inlined_call_operand.vmem [shape: f32[3], index: 0, kind: input, shape index: {}]   ;;  %s2418_s1 = inlined_call_operand.<no memory space> [shape: f32[1], index: 1, kind: input, shape index: {}]   ;;  %s2419_s2 = inlined_call_operand.vmem [shape: f32[8,256], index: 2, kind: input, shape index: {}]   ;;  %s2420_s3 = inlined_call_operand.hbm [shape: f32[8,256], index: 3, kind: input, shape index: {}, may-alias: {3,8}]   ;;  %s2421_s4 = inlined_call_operand.hbm [shape: bf16[256,256], index: 4, kind: input, shape index: {}]   ;;  %s2422_s5 = inlined_call_operand.hbm [shape: bf16[256,256], index: 5, kind: input, shape index: {}]   ;;  %s2423_s6 = inlined_call_operand.hbm [shape: bf16[256,256], index: 6, kind: input, shape index: {}]   ;;  %s2424_s7 = inlined_call_operand.hbm [shape: bf16[256,256], index: 7, kind: input, shape index: {}]   ;;  %s2425_s8 = inlined_call_operand.hbm [shape: f32[8,256], index: 8, kind: output, shape index: {}, may-alias: {3,8}]  }
   0x1   :  { %15 = vsyncpa [#allocation5], 0 }
   0x2   :  { %16 = vsyncpa [#allocation10], 0 }
   0x3   :  { %17 = vsyncpa [#allocation13], 0  ;;  %s47_s29 = sshll.u32 %s2421_s4, 4  ;;  %s48_s29 = int_to_ptr.hbm [resolvable:$true] %s47_s29 }
   0x4   :  { %18 = vsyncpa [#allocation6], 0  ;;  %s2114_s30 = smov [#allocation9]   ;;  %s73_s12 = sshll.u32 %s2423_s6, 4  ;;  %s74_s12 = int_to_ptr.hbm [resolvable:$true] %s73_s12 }
   0x5   :  { %s49_s9 = sshll.u32 %s2114_s30, 4  ;;  %s2115_s13 = smov 128   ;;  %s50_s9 = int_to_ptr.vmem [resolvable:$true] %s49_s9 }
   0x6   :  { %s2116_s14 = smov 8   ;;  %s2117_s15 = smov [#allocation12]  }
   0x7   :  { %55 = dma.hbm_to_vmem [thread:$0]  %s48_s29, 4096, %s50_s9, [#allocation10], %s2115_s13, %s2115_s13, %s2116_s14  }
   0x8   :  { %s75_s16 = sshll.u32 %s2117_s15, 4  ;;  %s24_s18 = sshll.u32 %s2417_s0, 4  ;;  %s76_s16 = int_to_ptr.vmem [resolvable:$true] %s75_s16  ;;  %s25_s18 = int_to_ptr.vmem [resolvable:$true] %s24_s18 }
   0x9   :  { %81 = dma.hbm_to_vmem [thread:$0]  %s74_s12, 4096, %s76_s16, [#allocation13], %s2115_s13, %s2115_s13, %s2116_s14  }
   0xa   :  { %s37_s20 = sshll.u32 %s2420_s3, 4  ;;  %s2118_s21 = smov [#allocation4]   ;;  %s38_s20 = int_to_ptr.hbm [resolvable:$true] %s37_s20 }
   0xb   :  { %27 = dma.vmem_to_smem %s25_s18, 16, %s2118_s21, [#allocation7]  }
   0xc   :  { %s2119_s22 = smov [#allocation8]   ;;  %s60_s26 = sshll.u32 %s2422_s5, 4  ;;  %s61_s26 = int_to_ptr.hbm [resolvable:$true] %s60_s26 }
   0xd   :  { %s39_s23 = sshll.u32 %s2119_s22, 4  ;;  %s86_s28 = sshll.u32 %s2424_s7, 4  ;;  %s40_s23 = int_to_ptr.vmem [resolvable:$true] %s39_s23  ;;  %s87_s28 = int_to_ptr.hbm [resolvable:$true] %s86_s28 }
   0xe   :  { %42 = dma.hbm_to_vmem [thread:$0]  %s38_s20, 256, %s40_s23, [#allocation5]  }
   0xf   :  { %s2120_s29 = smov [#allocation11]   ;;  %s2121_s3 = smov [#allocation14]  }
  0x10   :  { %s62_s30 = sshll.u32 %s2120_s29, 4  ;;  %s88_s9 = sshll.u32 %s2121_s3, 4  ;;  %s63_s30 = int_to_ptr.vmem [resolvable:$true] %s62_s30  ;;  %s89_s9 = int_to_ptr.vmem [resolvable:$true] %s88_s9 }
  0x11   :  { %68 = dma.hbm_to_vmem [thread:$0]  %s61_s26, 4096, %s63_s30, [#allocation10], %s2115_s13, %s2115_s13, %s2116_s14  }
  0x12   :  { %94 = dma.hbm_to_vmem [thread:$0]  %s87_s28, 4096, %s89_s9, [#allocation13], %s2115_s13, %s2115_s13, %s2116_s14  }
  0x13   :  { %2104 = dma.done.wait [#allocation7], 16  }
  0x14   :  { %2105 = vsyncadd [#allocation7], 4294967280 }
  0x15   :  { %2106 = dma.done.wait [#allocation5], 256  }
  0x16   :  { %2107 = vsyncadd [#allocation5], 4294967040 }
  0x17   :  { %2108 = dma.done.wait [#allocation10], 8192  }
  0x18   :  { %2109 = vsyncadd [#allocation10], 4294959104 }
  0x19   :  { %2110 = dma.done.wait [#allocation13], 8192  }
  0x1a   :  { %2111 = vsyncadd [#allocation13], 4294959104 }
  0x1b   :  { %119 = sfence }
  0x1c   :  { %v1339_v0 = vld [vmem:[#allocation14 + $0x70] sm:$0xf]  ;;  %v1810_v1 = vld [vmem:[#allocation14 + $0x74] sm:$0xf0]  ;;  %v1809_v5 = vld [vmem:[#allocation14 + $0x74] sm:$0xf] }
  0x1d   :  { %v1403_v2 = vld [vmem:[#allocation14 + $0xf0] sm:$0xf]  ;;  %v1340_v3 = vor.u32 %v1810_v1, %v1339_v0  ;;  %v1826_v4 = vld [vmem:[#allocation14 + $0xf4] sm:$0xf0]  ;;  %v1341_v6 = vld [vmem:[#allocation14 + $0x78] sm:$0xf0] }
  0x1e   :  { %v1404_v7 = vor.u32 %v1826_v4, %v1403_v2  ;;  %v1344_v8 = vor.u32 %v1809_v5, %v1341_v6  ;;  %v1825_v9 = vld [vmem:[#allocation14 + $0xf4] sm:$0xf]  ;;  %v1405_v10 = vld [vmem:[#allocation14 + $0xf8] sm:$0xf0]  ;;  %v1331_v11 = vld [vmem:[#allocation14 + $0x60] sm:$0xf] }
  0x1f   :  { %336 = vmatpush.bf16.msra.mxu0 %v1340_v3  ;;  %v1408_v12 = vor.u32 %v1825_v9, %v1405_v10  ;;  %v1808_v13 = vld [vmem:[#allocation14 + $0x64] sm:$0xf0]  ;;  %v1395_v14 = vld [vmem:[#allocation14 + $0xe0] sm:$0xf]  ;;  %v1807_v18 = vld [vmem:[#allocation14 + $0x64] sm:$0xf] }
  0x20   :  { %v1824_v15 = vld [vmem:[#allocation14 + $0xe4] sm:$0xf0]  ;;  %349 = vmatpush.bf16.msra.mxu1 %v1404_v7  ;;  %362 = vmatpush.bf16.msra.mxu2 %v1344_v8  ;;  %v1332_v16 = vor.u32 %v1808_v13, %v1331_v11  ;;  %v1333_v19 = vld [vmem:[#allocation14 + $0x68] sm:$0xf0]  ;;  %v1823_v20 = vld [vmem:[#allocation14 + $0xe4] sm:$0xf] }
  0x21   :  { %v1396_v17 = vor.u32 %v1824_v15, %v1395_v14  ;;  %375 = vmatpush.bf16.msra.mxu3 %v1408_v12  ;;  %v1336_v21 = vor.u32 %v1807_v18, %v1333_v19  ;;  %v1397_v22 = vld [vmem:[#allocation14 + $0xe8] sm:$0xf0]  ;;  %v1323_v23 = vld [vmem:[#allocation14 + $0x50] sm:$0xf]  ;;  %v1806_v24 = vld [vmem:[#allocation14 + $0x54] sm:$0xf0] }
  0x22   :  { %v1400_v25 = vor.u32 %v1823_v20, %v1397_v22  ;;  %v1387_v26 = vld [vmem:[#allocation14 + $0xd0] sm:$0xf]  ;;  %v1822_v27 = vld [vmem:[#allocation14 + $0xd4] sm:$0xf0]  ;;  %v1805_v28 = vld [vmem:[#allocation14 + $0x54] sm:$0xf]  ;;  %v1324_v29 = vor.u32 %v1806_v24, %v1323_v23 }
  0x23   :  { %337 = vmatpush.bf16.msra.mxu0 %v1332_v16  ;;  %v1325_v30 = vld [vmem:[#allocation14 + $0x58] sm:$0xf0]  ;;  %v1821_v31 = vld [vmem:[#allocation14 + $0xd4] sm:$0xf]  ;;  %v1388_v33 = vor.u32 %v1822_v27, %v1387_v26  ;;  %v1315_v35 = vld [vmem:[#allocation14 + $0x40] sm:$0xf] }
  0x24   :  { %v1389_v32 = vld [vmem:[#allocation14 + $0xd8] sm:$0xf0]  ;;  %350 = vmatpush.bf16.msra.mxu1 %v1396_v17  ;;  %363 = vmatpush.bf16.msra.mxu2 %v1336_v21  ;;  %v1328_v34 = vor.u32 %v1805_v28, %v1325_v30  ;;  %v1804_v36 = vld [vmem:[#allocation14 + $0x44] sm:$0xf0]  ;;  %v1379_v37 = vld [vmem:[#allocation14 + $0xc0] sm:$0xf] }
  0x25   :  { %376 = vmatpush.bf16.msra.mxu3 %v1400_v25  ;;  %v1392_v38 = vor.u32 %v1821_v31, %v1389_v32  ;;  %v1820_v39 = vld [vmem:[#allocation14 + $0xc4] sm:$0xf0]  ;;  %v1803_v40 = vld [vmem:[#allocation14 + $0x44] sm:$0xf]  ;;  %v1317_v41 = vld [vmem:[#allocation14 + $0x48] sm:$0xf0]  ;;  %v1316_v44 = vor.u32 %v1804_v36, %v1315_v35 }
  0x26   :  { %v1819_v42 = vld [vmem:[#allocation14 + $0xc4] sm:$0xf]  ;;  %v1381_v43 = vld [vmem:[#allocation14 + $0xc8] sm:$0xf0]  ;;  %v1380_v45 = vor.u32 %v1820_v39, %v1379_v37  ;;  %v1320_v46 = vor.u32 %v1803_v40, %v1317_v41  ;;  %v1307_v47 = vld [vmem:[#allocation14 + $0x30] sm:$0xf] }
  0x27   :  { %338 = vmatpush.bf16.msra.mxu0 %v1324_v29  ;;  %v1802_v48 = vld [vmem:[#allocation14 + $0x34] sm:$0xf0]  ;;  %v1371_v49 = vld [vmem:[#allocation14 + $0xb0] sm:$0xf]  ;;  %v1384_v50 = vor.u32 %v1819_v42, %v1381_v43  ;;  %v1801_v52 = vld [vmem:[#allocation14 + $0x34] sm:$0xf] }
  0x28   :  { %351 = vmatpush.bf16.msra.mxu1 %v1388_v33  ;;  %364 = vmatpush.bf16.msra.mxu2 %v1328_v34  ;;  %v1818_v51 = vld [vmem:[#allocation14 + $0xb4] sm:$0xf0]  ;;  %v1309_v53 = vld [vmem:[#allocation14 + $0x38] sm:$0xf0]  ;;  %v1817_v54 = vld [vmem:[#allocation14 + $0xb4] sm:$0xf]  ;;  %v1308_v56 = vor.u32 %v1802_v48, %v1307_v47 }
  0x29   :  { %377 = vmatpush.bf16.msra.mxu3 %v1392_v38  ;;  %v1373_v55 = vld [vmem:[#allocation14 + $0xb8] sm:$0xf0]  ;;  %v1372_v57 = vor.u32 %v1818_v51, %v1371_v49  ;;  %v1312_v58 = vor.u32 %v1801_v52, %v1309_v53  ;;  %v1299_v59 = vld [vmem:[#allocation14 + $0x20] sm:$0xf]  ;;  %v1800_v60 = vld [vmem:[#allocation14 + $0x24] sm:$0xf0] }
  0x2a   :  { %v1363_v61 = vld [vmem:[#allocation14 + $0xa0] sm:$0xf]  ;;  %v1376_v62 = vor.u32 %v1817_v54, %v1373_v55  ;;  %v1816_v63 = vld [vmem:[#allocation14 + $0xa4] sm:$0xf0]  ;;  %v1799_v0 = vld [vmem:[#allocation14 + $0x24] sm:$0xf]  ;;  %v1300_v4 = vor.u32 %v1800_v60, %v1299_v59 }
  0x2b   :  { %339 = vmatpush.bf16.msra.mxu0 %v1316_v44  ;;  %v1301_v1 = vld [vmem:[#allocation14 + $0x28] sm:$0xf0]  ;;  %v1815_v2 = vld [vmem:[#allocation14 + $0xa4] sm:$0xf]  ;;  %v1364_v5 = vor.u32 %v1816_v63, %v1363_v61  ;;  %v1291_v7 = vld [vmem:[#allocation14 + $0x10] sm:$0xf] }
  0x2c   :  { %352 = vmatpush.bf16.msra.mxu1 %v1380_v45  ;;  %365 = vmatpush.bf16.msra.mxu2 %v1320_v46  ;;  %v1365_v3 = vld [vmem:[#allocation14 + $0xa8] sm:$0xf0]  ;;  %v1304_v6 = vor.u32 %v1799_v0, %v1301_v1  ;;  %v1798_v8 = vld [vmem:[#allocation14 + $0x14] sm:$0xf0]  ;;  %v1355_v9 = vld [vmem:[#allocation14 + $0x90] sm:$0xf] }
  0x2d   :  { %378 = vmatpush.bf16.msra.mxu3 %v1384_v50  ;;  %v1368_v10 = vor.u32 %v1815_v2, %v1365_v3  ;;  %v1814_v11 = vld [vmem:[#allocation14 + $0x94] sm:$0xf0]  ;;  %v1797_v12 = vld [vmem:[#allocation14 + $0x14] sm:$0xf]  ;;  %v1293_v13 = vld [vmem:[#allocation14 + $0x18] sm:$0xf0]  ;;  %v1292_v16 = vor.u32 %v1798_v8, %v1291_v7 }
  0x2e   :  { %v1813_v14 = vld [vmem:[#allocation14 + $0x94] sm:$0xf]  ;;  %v1357_v15 = vld [vmem:[#allocation14 + $0x98] sm:$0xf0]  ;;  %v1283_v17 = vld [vmem:[#allocation14] sm:$0xf]  ;;  %v1356_v20 = vor.u32 %v1814_v11, %v1355_v9  ;;  %v1296_v21 = vor.u32 %v1797_v12, %v1293_v13 }
  0x2f   :  { %340 = vmatpush.bf16.msra.mxu0 %v1308_v56  ;;  %v1796_v18 = vld [vmem:[#allocation14 + $0x4] sm:$0xf0]  ;;  %v1347_v19 = vld [vmem:[#allocation14 + $0x80] sm:$0xf]  ;;  %v1795_v23 = vld [vmem:[#allocation14 + $0x4] sm:$0xf]  ;;  %v1360_v25 = vor.u32 %v1813_v14, %v1357_v15 }
  0x30   :  { %353 = vmatpush.bf16.msra.mxu1 %v1372_v57  ;;  %366 = vmatpush.bf16.msra.mxu2 %v1312_v58  ;;  %v1812_v22 = vld [vmem:[#allocation14 + $0x84] sm:$0xf0]  ;;  %v1285_v24 = vld [vmem:[#allocation14 + $0x8] sm:$0xf0]  ;;  %v1811_v26 = vld [vmem:[#allocation14 + $0x84] sm:$0xf]  ;;  %v1284_v31 = vor.u32 %v1796_v18, %v1283_v17 }
  0x31   :  { %379 = vmatpush.bf16.msra.mxu3 %v1376_v62  ;;  %v1349_v27 = vld [vmem:[#allocation14 + $0x88] sm:$0xf0]  ;;  %v1467_v28 = vld [vmem:[#allocation9 + $0x70] sm:$0xf]  ;;  %v1842_v29 = vld [vmem:[#allocation9 + $0x74] sm:$0xf0]  ;;  %v1348_v35 = vor.u32 %v1812_v22, %v1347_v19  ;;  %v1288_v36 = vor.u32 %v1795_v23, %v1285_v24 }
  0x32   :  { %v1531_v30 = vld [vmem:[#allocation9 + $0xf0] sm:$0xf]  ;;  %s121_s10 = smul.f32 2.0, %s2418_s1  ;;  %v1858_v32 = vld [vmem:[#allocation9 + $0xf4] sm:$0xf0]  ;;  %v1352_v40 = vor.u32 %v1811_v26, %v1349_v27  ;;  %v1468_v41 = vor.u32 %v1842_v29, %v1467_v28  ;;  %s640_s4 = sld [smem:[#allocation4]] }
  0x33   :  { %341 = vmatpush.bf16.msra.mxu0 %v1300_v4  ;;  %v1841_v33 = vld [vmem:[#allocation9 + $0x74] sm:$0xf]  ;;  %v1469_v34 = vld [vmem:[#allocation9 + $0x78] sm:$0xf0]  ;;  %v1532_v43 = vor.u32 %v1858_v32, %v1531_v30  ;;  %v1459_v45 = vld [vmem:[#allocation9 + $0x60] sm:$0xf] }
  0x34   :  { %354 = vmatpush.bf16.msra.mxu1 %v1364_v5  ;;  %367 = vmatpush.bf16.msra.mxu2 %v1304_v6  ;;  %v1857_v37 = vld [vmem:[#allocation9 + $0xf4] sm:$0xf]  ;;  %v1533_v38 = vld [vmem:[#allocation9 + $0xf8] sm:$0xf0]  ;;  %v1472_v44 = vor.u32 %v1841_v33, %v1469_v34  ;;  %v1840_v46 = vld [vmem:[#allocation9 + $0x64] sm:$0xf0]  ;;  %s122_s17 = smul.f32 %s121_s10, %s2418_s1 }
  0x35   :  { %380 = vmatpush.bf16.msra.mxu3 %v1368_v10  ;;  %v140_v39 = vld [vmem:[%s2419_s2] sm:$0xff]  ;;  %v141_v42 = vld [vmem:[%s2419_s2 + $0x8] sm:$0xff]  ;;  %v1523_v47 = vld [vmem:[#allocation9 + $0xe0] sm:$0xf]  ;;  %v1536_v48 = vor.u32 %v1857_v37, %v1533_v38  ;;  %v1460_v56 = vor.u32 %v1840_v46, %v1459_v45  ;;  %s1537_s18 = sld [smem:[#allocation4 + $0x1]]  ;;  %s2122_s19 = smov [#allocation15]  }
  0x36   :  { %v1856_v49 = vld [vmem:[#allocation9 + $0xe4] sm:$0xf0]  ;;  %v1839_v50 = vld [vmem:[#allocation9 + $0x64] sm:$0xf]  ;;  %v1461_v51 = vld [vmem:[#allocation9 + $0x68] sm:$0xf0]  ;;  %v142_v52 = vpack.c.bf16 %v140_v39, %v140_v39  ;;  %v143_v55 = vpack.c.bf16 %v141_v42, %v141_v42  ;;  %v2210_v62 = vstv %s122_s17 }
  0x37   :  { %342 = vmatpush.bf16.msra.mxu0 %v1292_v16  ;;  %v1855_v53 = vld [vmem:[#allocation9 + $0xe4] sm:$0xf]  ;;  %v1525_v54 = vld [vmem:[#allocation9 + $0xe8] sm:$0xf0]  ;;  %v1524_v57 = vor.u32 %v1856_v49, %v1523_v47  ;;  %v1464_v58 = vor.u32 %v1839_v50, %v1461_v51  ;;  %v1451_v59 = vld [vmem:[#allocation9 + $0x50] sm:$0xf]  ;;  %1934 = vrcp.f32 %v2210_v62  ;;  %vm129_vm0 = vweird.f32 %v2210_v62 }
  0x38   :  { %355 = vmatpush.bf16.msra.mxu1 %v1356_v20  ;;  %368 = vmatpush.bf16.msra.mxu2 %v1296_v21  ;;  %v1838_v60 = vld [vmem:[#allocation9 + $0x54] sm:$0xf0]  ;;  %v1515_v61 = vld [vmem:[#allocation9 + $0xd0] sm:$0xf]  ;;  %v1528_v63 = vor.u32 %v1855_v53, %v1525_v54  ;;  %v1837_v1 = vld [vmem:[#allocation9 + $0x54] sm:$0xf] }
  0x39   :  { %381 = vmatpush.bf16.msra.mxu3 %v1360_v25  ;;  %v1854_v0 = vld [vmem:[#allocation9 + $0xd4] sm:$0xf0]  ;;  %v1453_v2 = vld [vmem:[#allocation9 + $0x58] sm:$0xf0]  ;;  %v1853_v3 = vld [vmem:[#allocation9 + $0xd4] sm:$0xf]  ;;  %v1452_v5 = vor.u32 %v1838_v60, %v1451_v59 }
  0x3a   :  { %v1517_v4 = vld [vmem:[#allocation9 + $0xd8] sm:$0xf0]  ;;  %v1516_v6 = vor.u32 %v1854_v0, %v1515_v61  ;;  %v1456_v7 = vor.u32 %v1837_v1, %v1453_v2  ;;  %v1443_v8 = vld [vmem:[#allocation9 + $0x40] sm:$0xf]  ;;  %v1836_v9 = vld [vmem:[#allocation9 + $0x44] sm:$0xf0] }
  0x3b   :  { %343 = vmatpush.bf16.msra.mxu0 %v1284_v31  ;;  %v1507_v10 = vld [vmem:[#allocation9 + $0xc0] sm:$0xf]  ;;  %v1520_v11 = vor.u32 %v1853_v3, %v1517_v4  ;;  %v1852_v12 = vld [vmem:[#allocation9 + $0xc4] sm:$0xf0]  ;;  %v1835_v13 = vld [vmem:[#allocation9 + $0x44] sm:$0xf]  ;;  %v1444_v18 = vor.u32 %v1836_v9, %v1443_v8 }
  0x3c   :  { %356 = vmatpush.bf16.msra.mxu1 %v1348_v35  ;;  %369 = vmatpush.bf16.msra.mxu2 %v1288_v36  ;;  %v1445_v14 = vld [vmem:[#allocation9 + $0x48] sm:$0xf0]  ;;  %v1851_v15 = vld [vmem:[#allocation9 + $0xc4] sm:$0xf]  ;;  %v1435_v19 = vld [vmem:[#allocation9 + $0x30] sm:$0xf]  ;;  %v1508_v20 = vor.u32 %v1852_v12, %v1507_v10 }
  0x3d   :  { %382 = vmatpush.bf16.msra.mxu3 %v1352_v40  ;;  %v1509_v16 = vld [vmem:[#allocation9 + $0xc8] sm:$0xf0]  ;;  %v1935_v17 = vpop.eup %1934  ;;  %v1448_v21 = vor.u32 %v1835_v13, %v1445_v14  ;;  %v1834_v22 = vld [vmem:[#allocation9 + $0x34] sm:$0xf0]  ;;  %v1499_v23 = vld [vmem:[#allocation9 + $0xb0] sm:$0xf] }
  0x3e   :  { %344 = vmatmul.bf16.vlgmr.msra.gmra.mxu0 %v142_v52  ;;  %v1850_v24 = vld [vmem:[#allocation9 + $0xb4] sm:$0xf0]  ;;  %v125_v25 = vmul.f32 %v1935_v17, %v2210_v62  ;;  %v1512_v26 = vor.u32 %v1851_v15, %v1509_v16  ;;  %v1833_v27 = vld [vmem:[#allocation9 + $0x34] sm:$0xf]  ;;  %v1437_v28 = vld [vmem:[#allocation9 + $0x38] sm:$0xf0]  ;;  %vm130_vm1 = vweird.f32 %v1935_v17  ;;  %v1436_v33 = vor.u32 %v1834_v22, %v1435_v19 }
  0x3f   :  { %588 = vmatpush.bf16.msrb.mxu0 %v1468_v41  ;;  %370 = vmatmul.bf16.vlgmr.msra.gmra.mxu2 %v142_v52  ;;  %v1849_v29 = vld [vmem:[#allocation9 + $0xb4] sm:$0xf]  ;;  %v1501_v30 = vld [vmem:[#allocation9 + $0xb8] sm:$0xf0]  ;;  %v133_v32 = vand.u32 2147483647, %v2210_v62  ;;  %v1500_v36 = vor.u32 %v1850_v24, %v1499_v23  ;;  %v1440_v37 = vor.u32 %v1833_v27, %v1437_v28  ;;  %vm2220_vm2 = vmor %vm129_vm0, %vm130_vm1 }
  0x40   :  { %601 = vmatpush.bf16.msrb.mxu1 %v1532_v43  ;;  %614 = vmatpush.bf16.msrb.mxu2 %v1472_v44  ;;  %v126_v31 = vsub.f32 1.0, %v125_v25  ;;  %v1427_v34 = vld [vmem:[#allocation9 + $0x20] sm:$0xf]  ;;  %v135_v35 = vand.u32 2147483648, %v2210_v62  ;;  %v1832_v38 = vld [vmem:[#allocation9 + $0x24] sm:$0xf0]  ;;  %v1504_v42 = vor.u32 %v1849_v29, %v1501_v30 }
  0x41   :  { %627 = vmatpush.bf16.msrb.mxu3 %v1536_v48  ;;  %357 = vmatmul.bf16.vlgmr.msra.gmra.mxu1 %v143_v55  ;;  %v1491_v39 = vld [vmem:[#allocation9 + $0xa0] sm:$0xf]  ;;  %v1848_v40 = vld [vmem:[#allocation9 + $0xa4] sm:$0xf0]  ;;  %v1831_v43 = vld [vmem:[#allocation9 + $0x24] sm:$0xf]  ;;  %v1428_v51 = vor.u32 %v1832_v38, %v1427_v34 }
  0x42   :  { %383 = vmatmul.bf16.vlgmr.msra.gmra.mxu3 %v143_v55  ;;  %v127_v41 = vmul.f32 %v1935_v17, %v126_v31  ;;  %v1429_v44 = vld [vmem:[#allocation9 + $0x28] sm:$0xf0]  ;;  %v136_v46 = vor.u32 1.1754944e-38, %v135_v35  ;;  %v1847_v47 = vld [vmem:[#allocation9 + $0xa4] sm:$0xf]  ;;  %vm2224_vm3 = vcmp.eq.f32.partialorder %v133_v32, 8.507059e+37  ;;  %v1492_v52 = vor.u32 %v1848_v40, %v1491_v39 }
  0x43   :  { %589 = vmatpush.bf16.msrb.mxu0 %v1460_v56  ;;  %v1493_v48 = vld [vmem:[#allocation9 + $0xa8] sm:$0xf0]  ;;  %v1432_v53 = vor.u32 %v1831_v43, %v1429_v44  ;;  %v1419_v54 = vld [vmem:[#allocation9 + $0x10] sm:$0xf]  ;;  %v1830_v55 = vld [vmem:[#allocation9 + $0x14] sm:$0xf0] }
  0x44   :  { %602 = vmatpush.bf16.msrb.mxu1 %v1524_v57  ;;  %615 = vmatpush.bf16.msrb.mxu2 %v1464_v58  ;;  %v128_v49 = vadd.f32 %v1935_v17, %v127_v41  ;;  %v1483_v56 = vld [vmem:[#allocation9 + $0x90] sm:$0xf]  ;;  %v1496_v58 = vor.u32 %v1847_v47, %v1493_v48  ;;  %v1846_v59 = vld [vmem:[#allocation9 + $0x94] sm:$0xf0]  ;;  %v1829_v60 = vld [vmem:[#allocation9 + $0x14] sm:$0xf]  ;;  %v1420_v1 = vor.u32 %v1830_v55, %v1419_v54 }
  0x45   :  { %628 = vmatpush.bf16.msrb.mxu3 %v1528_v63  ;;  %v1421_v61 = vld [vmem:[#allocation9 + $0x18] sm:$0xf0]  ;;  %v1845_v63 = vld [vmem:[#allocation9 + $0x94] sm:$0xf]  ;;  %v1484_v2 = vor.u32 %v1846_v59, %v1483_v56  ;;  %v1411_v4 = vld [vmem:[#allocation9] sm:$0xf] }
  0x46   :  { %v132_v57 = vsel %vm2220_vm2, %v1935_v17, %v128_v49  ;;  %v1485_v0 = vld [vmem:[#allocation9 + $0x98] sm:$0xf0]  ;;  %v1424_v3 = vor.u32 %v1829_v60, %v1421_v61  ;;  %v1844_v8 = vld [vmem:[#allocation9 + $0x84] sm:$0xf0]  ;;  %v1827_v9 = vld [vmem:[#allocation9 + $0x4] sm:$0xf] }
  0x47   :  { %590 = vmatpush.bf16.msrb.mxu0 %v1452_v5  ;;  %v137_v62 = vsel %vm2224_vm3, %v136_v46, %v132_v57  ;;  %v1828_v5 = vld [vmem:[#allocation9 + $0x4] sm:$0xf0]  ;;  %v1413_v10 = vld [vmem:[#allocation9 + $0x8] sm:$0xf0]  ;;  %v390_v14 = vld [vmem:[#allocation8] sm:$0xff]  ;;  %s1538_s6 = sld [smem:[#allocation4 + $0x2]] }
  0x48   :  { %603 = vmatpush.bf16.msrb.mxu1 %v1516_v6  ;;  %616 = vmatpush.bf16.msrb.mxu2 %v1456_v7  ;;  %1923 = vpush %v137_v62  ;;  %v1475_v6 = vld [vmem:[#allocation9 + $0x80] sm:$0xf]  ;;  %v1488_v7 = vor.u32 %v1845_v63, %v1485_v0  ;;  %v1477_v12 = vld [vmem:[#allocation9 + $0x88] sm:$0xf0]  ;;  %v1412_v13 = vor.u32 %v1828_v5, %v1411_v4  ;;  %v391_v17 = vld [vmem:[#allocation8 + $0x8] sm:$0xff]  ;;  %s1266_s20 = sshll.u32 %s2122_s19, 4  ;;  %s1267_s20 = int_to_ptr.vmem [resolvable:$true] %s1266_s20 }
  0x49   :  { %629 = vmatpush.bf16.msrb.mxu3 %v1520_v11  ;;  %v1843_v11 = vld [vmem:[#allocation9 + $0x84] sm:$0xf]  ;;  %v1476_v15 = vor.u32 %v1844_v8, %v1475_v6  ;;  %v1416_v16 = vor.u32 %v1827_v9, %v1413_v10  ;;  %v392_v19 = vpack.c.bf16 %v390_v14, %v390_v14  ;;  %v1874_v22 = vld [vmem:[#allocation11 + $0x74] sm:$0xf0]  ;;  %v1873_v23 = vld [vmem:[#allocation11 + $0x74] sm:$0xf] }
  0x4a   :  { %v1599_v25 = vld [vmem:[#allocation11 + $0x78] sm:$0xf0]  ;;  %v1589_v27 = vld [vmem:[#allocation11 + $0x60] sm:$0xf]  ;;  %v1872_v28 = vld [vmem:[#allocation11 + $0x64] sm:$0xf0] }
  0x4b   :  { %591 = vmatpush.bf16.msrb.mxu0 %v1444_v18  ;;  %v1480_v18 = vor.u32 %v1843_v11, %v1477_v12  ;;  %v1871_v29 = vld [vmem:[#allocation11 + $0x64] sm:$0xf]  ;;  %v2238_v30 = vor.u32 %v1872_v28, %v1589_v27  ;;  %v1591_v31 = vld [vmem:[#allocation11 + $0x68] sm:$0xf0]  ;;  %v1890_v34 = vld [vmem:[#allocation11 + $0xf4] sm:$0xf0] }
  0x4c   :  { %604 = vmatpush.bf16.msrb.mxu1 %v1508_v20  ;;  %617 = vmatpush.bf16.msrb.mxu2 %v1448_v21  ;;  %v393_v20 = vpack.c.bf16 %v391_v17, %v391_v17  ;;  %v1597_v21 = vld [vmem:[#allocation11 + $0x70] sm:$0xf]  ;;  %v2240_v32 = vor.u32 %v1871_v29, %v1591_v31  ;;  %v1889_v35 = vld [vmem:[#allocation11 + $0xf4] sm:$0xf]  ;;  %v1870_v41 = vld [vmem:[#allocation11 + $0x54] sm:$0xf0] }
  0x4d   :  { %630 = vmatpush.bf16.msrb.mxu3 %v1512_v26  ;;  %v2232_v24 = vor.u32 %v1874_v22, %v1597_v21  ;;  %v2234_v26 = vor.u32 %v1873_v23, %v1599_v25  ;;  %v1581_v40 = vld [vmem:[#allocation11 + $0x50] sm:$0xf]  ;;  %v1583_v45 = vld [vmem:[#allocation11 + $0x58] sm:$0xf0]  ;;  %v1653_v47 = vld [vmem:[#allocation11 + $0xe0] sm:$0xf] }
  0x4e   :  { %v2253_v44 = vor.u32 %v1870_v41, %v1581_v40  ;;  %v1888_v48 = vld [vmem:[#allocation11 + $0xe4] sm:$0xf0]  ;;  %v1887_v49 = vld [vmem:[#allocation11 + $0xe4] sm:$0xf]  ;;  %v1645_v61 = vld [vmem:[#allocation11 + $0xd0] sm:$0xf] }
  0x4f   :  { %592 = vmatpush.bf16.msrb.mxu0 %v1436_v33  ;;  %v1661_v33 = vld [vmem:[#allocation11 + $0xf0] sm:$0xf]  ;;  %v2259_v50 = vor.u32 %v1888_v48, %v1653_v47  ;;  %v1868_v54 = vld [vmem:[#allocation11 + $0x44] sm:$0xf0]  ;;  %v1867_v55 = vld [vmem:[#allocation11 + $0x44] sm:$0xf] }
  0x50   :  { %605 = vmatpush.bf16.msrb.mxu1 %v1500_v36  ;;  %618 = vmatpush.bf16.msrb.mxu2 %v1440_v37  ;;  %v2243_v36 = vor.u32 %v1890_v34, %v1661_v33  ;;  %v1663_v37 = vld [vmem:[#allocation11 + $0xf8] sm:$0xf0]  ;;  %v1886_v62 = vld [vmem:[#allocation11 + $0xd4] sm:$0xf0]  ;;  %v1885_v63 = vld [vmem:[#allocation11 + $0xd4] sm:$0xf] }
  0x51   :  { %631 = vmatpush.bf16.msrb.mxu3 %v1504_v42  ;;  %v2248_v39 = vor.u32 %v1889_v35, %v1663_v37  ;;  %v1869_v42 = vld [vmem:[#allocation11 + $0x54] sm:$0xf]  ;;  %v2275_v0 = vor.u32 %v1886_v62, %v1645_v61  ;;  %v1565_v4 = vld [vmem:[#allocation11 + $0x30] sm:$0xf]  ;;  %v1866_v5 = vld [vmem:[#allocation11 + $0x34] sm:$0xf0] }
  0x52   :  { %v2256_v46 = vor.u32 %v1869_v42, %v1583_v45  ;;  %v1865_v6 = vld [vmem:[#allocation11 + $0x34] sm:$0xf]  ;;  %v2281_v8 = vor.u32 %v1866_v5, %v1565_v4  ;;  %v1567_v9 = vld [vmem:[#allocation11 + $0x38] sm:$0xf0]  ;;  %v1637_v11 = vld [vmem:[#allocation11 + $0xc0] sm:$0xf] }
  0x53   :  { %593 = vmatpush.bf16.msrb.mxu0 %v1428_v51  ;;  %v1655_v51 = vld [vmem:[#allocation11 + $0xe8] sm:$0xf0]  ;;  %v2284_v10 = vor.u32 %v1865_v6, %v1567_v9  ;;  %v1884_v12 = vld [vmem:[#allocation11 + $0xc4] sm:$0xf0]  ;;  %v1557_v17 = vld [vmem:[#allocation11 + $0x20] sm:$0xf] }
  0x54   :  { %606 = vmatpush.bf16.msrb.mxu1 %v1492_v52  ;;  %619 = vmatpush.bf16.msrb.mxu2 %v1432_v53  ;;  %v2262_v52 = vor.u32 %v1887_v49, %v1655_v51  ;;  %v1573_v53 = vld [vmem:[#allocation11 + $0x40] sm:$0xf]  ;;  %v2287_v14 = vor.u32 %v1884_v12, %v1637_v11  ;;  %v1559_v22 = vld [vmem:[#allocation11 + $0x28] sm:$0xf0]  ;;  %v1629_v27 = vld [vmem:[#allocation11 + $0xb0] sm:$0xf] }
  0x55   :  { %632 = vmatpush.bf16.msrb.mxu3 %v1496_v58  ;;  %v2267_v57 = vor.u32 %v1868_v54, %v1573_v53  ;;  %v1575_v58 = vld [vmem:[#allocation11 + $0x48] sm:$0xf0]  ;;  %v1882_v28 = vld [vmem:[#allocation11 + $0xb4] sm:$0xf0]  ;;  %v1881_v29 = vld [vmem:[#allocation11 + $0xb4] sm:$0xf] }
  0x56   :  { %v2272_v60 = vor.u32 %v1867_v55, %v1575_v58  ;;  %v2299_v31 = vor.u32 %v1882_v28, %v1629_v27  ;;  %v1631_v33 = vld [vmem:[#allocation11 + $0xb8] sm:$0xf0]  ;;  %v1549_v35 = vld [vmem:[#allocation11 + $0x10] sm:$0xf]  ;;  %v1862_v37 = vld [vmem:[#allocation11 + $0x14] sm:$0xf0]  ;;  %v2369_v28 = vstv %s640_s4 }
  0x57   :  { %594 = vmatpush.bf16.msrb.mxu0 %v1420_v1  ;;  %v1647_v1 = vld [vmem:[#allocation11 + $0xd8] sm:$0xf0]  ;;  %v2302_v34 = vor.u32 %v1881_v29, %v1631_v33  ;;  %v1861_v40 = vld [vmem:[#allocation11 + $0x14] sm:$0xf]  ;;  %v2305_v41 = vor.u32 %v1862_v37, %v1549_v35  ;;  %v1621_v47 = vld [vmem:[#allocation11 + $0xa0] sm:$0xf] }
  0x58   :  { %607 = vmatpush.bf16.msrb.mxu1 %v1484_v2  ;;  %620 = vmatpush.bf16.msrb.mxu2 %v1424_v3  ;;  %v2278_v3 = vor.u32 %v1885_v63, %v1647_v1  ;;  %v1551_v42 = vld [vmem:[#allocation11 + $0x18] sm:$0xf0]  ;;  %v1880_v48 = vld [vmem:[#allocation11 + $0xa4] sm:$0xf0]  ;;  %v1879_v49 = vld [vmem:[#allocation11 + $0xa4] sm:$0xf] }
  0x59   :  { %633 = vmatpush.bf16.msrb.mxu3 %v1488_v7  ;;  %v2308_v45 = vor.u32 %v1861_v40, %v1551_v42  ;;  %v2311_v51 = vor.u32 %v1880_v48, %v1621_v47  ;;  %v1623_v53 = vld [vmem:[#allocation11 + $0xa8] sm:$0xf0]  ;;  %v1541_v55 = vld [vmem:[#allocation11] sm:$0xf]  ;;  %v1860_v58 = vld [vmem:[#allocation11 + $0x4] sm:$0xf0] }
  0x5a   :  { %v2314_v54 = vor.u32 %v1879_v49, %v1623_v53  ;;  %v1859_v61 = vld [vmem:[#allocation11 + $0x4] sm:$0xf]  ;;  %v2317_v62 = vor.u32 %v1860_v58, %v1541_v55  ;;  %v1543_v63 = vld [vmem:[#allocation11 + $0x8] sm:$0xf0]  ;;  %v1878_v4 = vld [vmem:[#allocation11 + $0x94] sm:$0xf0] }
  0x5b   :  { %595 = vmatpush.bf16.msrb.mxu0 %v1412_v13  ;;  %v1883_v13 = vld [vmem:[#allocation11 + $0xc4] sm:$0xf]  ;;  %v2320_v1 = vor.u32 %v1859_v61, %v1543_v63  ;;  %v1877_v5 = vld [vmem:[#allocation11 + $0x94] sm:$0xf]  ;;  %v1605_v11 = vld [vmem:[#allocation11 + $0x80] sm:$0xf] }
  0x5c   :  { %608 = vmatpush.bf16.msrb.mxu1 %v1476_v15  ;;  %621 = vmatpush.bf16.msrb.mxu2 %v1416_v16  ;;  %v1639_v15 = vld [vmem:[#allocation11 + $0xc8] sm:$0xf0]  ;;  %v1876_v12 = vld [vmem:[#allocation11 + $0x84] sm:$0xf0]  ;;  %s1268_s23 = sshll.u32 %s2425_s8, 4  ;;  %s1269_s23 = int_to_ptr.hbm [resolvable:$true] %s1268_s23 }
  0x5d   :  { %634 = vmatpush.bf16.msrb.mxu3 %v1480_v18  ;;  %v2290_v16 = vor.u32 %v1883_v13, %v1639_v15  ;;  %v1864_v18 = vld [vmem:[#allocation11 + $0x24] sm:$0xf0]  ;;  %v1875_v13 = vld [vmem:[#allocation11 + $0x84] sm:$0xf]  ;;  %v2332_v15 = vor.u32 %v1876_v12, %v1605_v11 }
  0x5e   :  { %596 = vmatmul.bf16.vlgmr.msrb.gmra.mxu0 %v392_v19  ;;  %v2293_v21 = vor.u32 %v1864_v18, %v1557_v17  ;;  %v1607_v17 = vld [vmem:[#allocation11 + $0x88] sm:$0xf0] }
  0x5f   :  { %609 = vmatmul.bf16.vlgmr.msrb.gmra.mxu1 %v393_v20  ;;  %622 = vmatmul.bf16.vlgmr.msrb.gmra.mxu2 %v392_v19  ;;  %v1863_v19 = vld [vmem:[#allocation11 + $0x24] sm:$0xf] }
  0x60   :  { %635 = vmatmul.bf16.vlgmr.msrb.gmra.mxu3 %v393_v20  ;;  %863 = vmatpush.bf16.msra.mxu0 %v2232_v24  ;;  %v2296_v25 = vor.u32 %v1863_v19, %v1559_v22  ;;  %v2338_v19 = vor.u32 %v1875_v13, %v1607_v17 }
  0x61   :  { %889 = vmatpush.bf16.msra.mxu2 %v2234_v26  ;;  %876 = vmatpush.bf16.msra.mxu1 %v2243_v36 }
  0x62   :  { %902 = vmatpush.bf16.msra.mxu3 %v2248_v39 }
  0x64   :  { %864 = vmatpush.bf16.msra.mxu0 %v2238_v30 }
  0x65   :  { %890 = vmatpush.bf16.msra.mxu2 %v2240_v32  ;;  %877 = vmatpush.bf16.msra.mxu1 %v2259_v50 }
  0x66   :  { %903 = vmatpush.bf16.msra.mxu3 %v2262_v52 }
  0x68   :  { %865 = vmatpush.bf16.msra.mxu0 %v2253_v44 }
  0x69   :  { %891 = vmatpush.bf16.msra.mxu2 %v2256_v46  ;;  %878 = vmatpush.bf16.msra.mxu1 %v2275_v0 }
  0x6a   :  { %904 = vmatpush.bf16.msra.mxu3 %v2278_v3 }
  0x6c   :  { %866 = vmatpush.bf16.msra.mxu0 %v2267_v57 }
  0x6d   :  { %892 = vmatpush.bf16.msra.mxu2 %v2272_v60  ;;  %879 = vmatpush.bf16.msra.mxu1 %v2287_v14 }
  0x6e   :  { %905 = vmatpush.bf16.msra.mxu3 %v2290_v16 }
  0x70   :  { %867 = vmatpush.bf16.msra.mxu0 %v2281_v8 }
  0x71   :  { %893 = vmatpush.bf16.msra.mxu2 %v2284_v10  ;;  %880 = vmatpush.bf16.msra.mxu1 %v2299_v31 }
  0x72   :  { %906 = vmatpush.bf16.msra.mxu3 %v2302_v34 }
  0x74   :  { %868 = vmatpush.bf16.msra.mxu0 %v2293_v21 }
  0x75   :  { %894 = vmatpush.bf16.msra.mxu2 %v2296_v25  ;;  %881 = vmatpush.bf16.msra.mxu1 %v2311_v51 }
  0x76   :  { %907 = vmatpush.bf16.msra.mxu3 %v2314_v54 }
  0x78   :  { %869 = vmatpush.bf16.msra.mxu0 %v2305_v41 }
  0x79   :  { %895 = vmatpush.bf16.msra.mxu2 %v2308_v45  ;;  %s1924_s1 = spop %1923 }
  0x7a   :  { %s139_s2 = smul.f32 -1.0, %s1924_s1 }
  0x7c   :  { %870 = vmatpush.bf16.msra.mxu0 %v2317_v62 }
  0x7d   :  { %896 = vmatpush.bf16.msra.mxu2 %v2320_v1 }
  0x80   :  { %939 = vmatpush.bf16.msrb.mxu0 %v2232_v24 }
  0x81   :  { %965 = vmatpush.bf16.msrb.mxu2 %v2234_v26 }
  0x84   :  { %940 = vmatpush.bf16.msrb.mxu0 %v2238_v30 }
  0x85   :  { %966 = vmatpush.bf16.msrb.mxu2 %v2240_v32 }
  0x88   :  { %941 = vmatpush.bf16.msrb.mxu0 %v2253_v44 }
  0x89   :  { %967 = vmatpush.bf16.msrb.mxu2 %v2256_v46 }
  0x8c   :  { %942 = vmatpush.bf16.msrb.mxu0 %v2267_v57 }
  0x8d   :  { %968 = vmatpush.bf16.msrb.mxu2 %v2272_v60 }
  0x90   :  { %943 = vmatpush.bf16.msrb.mxu0 %v2281_v8 }
  0x91   :  { %969 = vmatpush.bf16.msrb.mxu2 %v2284_v10  ;;  %v2375_v10 = vstv %s1538_s6 }
  0x94   :  { %944 = vmatpush.bf16.msrb.mxu0 %v2293_v21 }
  0x95   :  { %970 = vmatpush.bf16.msrb.mxu2 %v2296_v25 }
  0x98   :  { %945 = vmatpush.bf16.msrb.mxu0 %v2305_v41 }
  0x99   :  { %971 = vmatpush.bf16.msrb.mxu2 %v2308_v45 }
  0x9c   :  { %946 = vmatpush.bf16.msrb.mxu0 %v2317_v62 }
  0x9d   :  { %972 = vmatpush.bf16.msrb.mxu2 %v2320_v1 }
  0xbb   :  { %v2245_v38 = vpop.f32.mrf.mxu0 }
  0xbe   :  { %v2250_v43 = vpop.f32.mrf.mxu1 }
  0xbf   :  { %v2336_v18 = vadd.f32 %v2250_v43, %v2245_v38  ;;  %v2347_v38 = vstv %s139_s2 }
  0xc2   :  { %v2264_v56 = vpop.f32.mrf.mxu2 }
  0xc3   :  { %v347_v2 = vpop.f32.mrf.mxu0 }
  0xc4   :  { %v1613_v2 = vld [vmem:[#allocation11 + $0x90] sm:$0xf] }
  0xc5   :  { %v2269_v59 = vpop.f32.mrf.mxu3  ;;  %v2323_v6 = vor.u32 %v1878_v4, %v1613_v2 }
  0xc6   :  { %v360_v7 = vpop.f32.mrf.mxu1  ;;  %v2353_v30 = vadd.f32 %v2269_v59, %v2264_v56 }
  0xc7   :  { %v1615_v7 = vld [vmem:[#allocation11 + $0x98] sm:$0xf0]  ;;  %882 = vmatpush.bf16.msra.mxu1 %v2323_v6 }
  0xc8   :  { %v2326_v9 = vor.u32 %v1877_v5, %v1615_v7 }
  0xca   :  { %v373_v20 = vpop.f32.mrf.mxu2  ;;  %908 = vmatpush.bf16.msra.mxu3 %v2326_v9 }
  0xcb   :  { %883 = vmatpush.bf16.msra.mxu1 %v2332_v15 }
  0xcd   :  { %v386_v23 = vpop.f32.mrf.mxu3 }
  0xce   :  { %909 = vmatpush.bf16.msra.mxu3 %v2338_v19 }
  0xcf   :  { %952 = vmatpush.bf16.msrb.mxu1 %v2243_v36 }
  0xd2   :  { %978 = vmatpush.bf16.msrb.mxu3 %v2248_v39 }
  0xd3   :  { %953 = vmatpush.bf16.msrb.mxu1 %v2259_v50 }
  0xd6   :  { %979 = vmatpush.bf16.msrb.mxu3 %v2262_v52 }
  0xd7   :  { %954 = vmatpush.bf16.msrb.mxu1 %v2275_v0 }
  0xda   :  { %980 = vmatpush.bf16.msrb.mxu3 %v2278_v3  ;;  %v2371_v3 = vstv %s1537_s18 }
  0xdb   :  { %v597_v24 = vpop.f32.mrf.mxu0  ;;  %955 = vmatpush.bf16.msrb.mxu1 %v2287_v14 }
  0xdc   :  { %v598_v20 = vadd.f32 %v597_v24, %v2336_v18  ;;  %v610_v22 = vpop.f32.mrf.mxu1 }
  0xde   :  { %v611_v26 = vadd.f32 %v610_v22, %v598_v20  ;;  %981 = vmatpush.bf16.msrb.mxu3 %v2290_v16 }
  0xdf   :  { %956 = vmatpush.bf16.msrb.mxu1 %v2299_v31 }
  0xe0   :  { %v644_v43 = vmul.f32 %v611_v26, %v611_v26  ;;  %v642_v14 = vmul.f32 %v2369_v28, %v611_v26 }
  0xe2   :  { %v647_v32 = vmul.f32 %v2347_v38, %v644_v43  ;;  %v623_v23 = vpop.f32.mrf.mxu2  ;;  %982 = vmatpush.bf16.msrb.mxu3 %v2302_v34 }
  0xe3   :  { %v624_v36 = vadd.f32 %v623_v23, %v2353_v30  ;;  %v636_v39 = vpop.f32.mrf.mxu3  ;;  %v599_v27 = vpop.f32.mrf.mxu0  ;;  %957 = vmatpush.bf16.msrb.mxu1 %v2311_v51 }
  0xe4   :  { %v649_v44 = vmul.f32 1.442695, %v647_v32  ;;  %v612_v46 = vpop.f32.mrf.mxu1 }
  0xe5   :  { %v637_v56 = vadd.f32 %v636_v39, %v624_v36 }
  0xe6   :  { %1936 = vpow2.f32 %v649_v44  ;;  %983 = vmatpush.bf16.msrb.mxu3 %v2314_v54 }
  0xe7   :  { %v645_v50 = vmul.f32 %v637_v56, %v637_v56  ;;  %958 = vmatpush.bf16.msrb.mxu1 %v2323_v6  ;;  %v643_v37 = vmul.f32 %v2369_v28, %v637_v56 }
  0xe9   :  { %v648_v52 = vmul.f32 %v2347_v38, %v645_v50 }
  0xea   :  { %v625_v57 = vpop.f32.mrf.mxu2  ;;  %984 = vmatpush.bf16.msrb.mxu3 %v2326_v9 }
  0xeb   :  { %v651_v59 = vmul.f32 1.442695, %v648_v52  ;;  %v638_v60 = vpop.f32.mrf.mxu3  ;;  %959 = vmatpush.bf16.msrb.mxu1 %v2332_v15  ;;  %v1725_v52 = vld [vmem:[#allocation12 + $0x70] sm:$0xf]  ;;  %v1906_v57 = vld [vmem:[#allocation12 + $0x74] sm:$0xf0] }
  0xec   :  { %v1937_v0 = vpop.eup %1936  ;;  %v1726_v60 = vor.u32 %v1906_v57, %v1725_v52  ;;  %v1687_v52 = vld [vmem:[#allocation12 + $0x28] sm:$0xf0] }
  0xed   :  { %1938 = vpow2.f32 %v651_v59  ;;  %v653_v8 = vmul.f32 %v1937_v0, %v611_v26  ;;  %v1905_v59 = vld [vmem:[#allocation12 + $0x74] sm:$0xf] }
  0xee   :  { %985 = vmatpush.bf16.msrb.mxu3 %v2338_v19 }
  0xef   :  { %v657_v16 = vmul.f32 %v2371_v3, %v653_v8  ;;  %v661_v21 = vmul.f32 %v1937_v0, %v653_v8  ;;  %v1727_v0 = vld [vmem:[#allocation12 + $0x78] sm:$0xf0] }
  0xf0   :  { %v1730_v8 = vor.u32 %v1905_v59, %v1727_v0  ;;  %v1757_v59 = vld [vmem:[#allocation12 + $0xb0] sm:$0xf]  ;;  %v1913_v0 = vld [vmem:[#allocation12 + $0xb4] sm:$0xf] }
  0xf1   :  { %v659_v29 = vadd.f32 %v657_v16, %v642_v14  ;;  %v665_v25 = vmul.f32 %v2375_v10, %v661_v21  ;;  %v1717_v14 = vld [vmem:[#allocation12 + $0x60] sm:$0xf]  ;;  %v1904_v16 = vld [vmem:[#allocation12 + $0x64] sm:$0xf0]  ;;  %v1903_v21 = vld [vmem:[#allocation12 + $0x64] sm:$0xf] }
  0xf3   :  { %v1939_v31 = vpop.eup %1938  ;;  %v667_v33 = vadd.f32 %v665_v25, %v659_v29  ;;  %v1718_v29 = vor.u32 %v1904_v16, %v1717_v14  ;;  %v1719_v25 = vld [vmem:[#allocation12 + $0x68] sm:$0xf0]  ;;  %v1759_v14 = vld [vmem:[#allocation12 + $0xb8] sm:$0xf0] }
  0xf4   :  { %v654_v34 = vmul.f32 %v1939_v31, %v637_v56  ;;  %v1762_v16 = vor.u32 %v1913_v0, %v1759_v14 }
  0xf5   :  { %v669_v35 = vpack.c.bf16 %v667_v33, %v667_v33  ;;  %v1789_v33 = vld [vmem:[#allocation12 + $0xf0] sm:$0xf] }
  0xf6   :  { %v658_v40 = vmul.f32 %v2371_v3, %v654_v34  ;;  %v662_v41 = vmul.f32 %v1939_v31, %v654_v34  ;;  %v1722_v31 = vor.u32 %v1903_v21, %v1719_v25  ;;  %v1922_v34 = vld [vmem:[#allocation12 + $0xf4] sm:$0xf0]  ;;  %v1677_v21 = vld [vmem:[#allocation12 + $0x10] sm:$0xf]  ;;  %v1893_v25 = vld [vmem:[#allocation12 + $0x14] sm:$0xf] }
  0xf7   :  { %871 = vmatmul.bf16.vlgmr.msra.gmra.mxu0 %v669_v35  ;;  %897 = vmatmul.bf16.vlgmr.msra.gmra.mxu2 %v669_v35  ;;  %v1921_v35 = vld [vmem:[#allocation12 + $0xf4] sm:$0xf] }
  0xf8   :  { %v660_v42 = vadd.f32 %v658_v40, %v643_v37  ;;  %v666_v45 = vmul.f32 %v2375_v10, %v662_v41  ;;  %1207 = vmatpush.bf16.msra.mxu0 %v1726_v60  ;;  %1233 = vmatpush.bf16.msra.mxu2 %v1730_v8  ;;  %v1790_v37 = vor.u32 %v1922_v34, %v1789_v33  ;;  %v1791_v40 = vld [vmem:[#allocation12 + $0xf8] sm:$0xf0]  ;;  %v1914_v60 = vld [vmem:[#allocation12 + $0xb4] sm:$0xf0] }
  0xf9   :  { %v1794_v41 = vor.u32 %v1921_v35, %v1791_v40  ;;  %v1758_v8 = vor.u32 %v1914_v60, %v1757_v59  ;;  %v1679_v33 = vld [vmem:[#allocation12 + $0x18] sm:$0xf0]  ;;  %v1749_v35 = vld [vmem:[#allocation12 + $0xa0] sm:$0xf]  ;;  %v1911_v40 = vld [vmem:[#allocation12 + $0xa4] sm:$0xf] }
  0xfa   :  { %v668_v47 = vadd.f32 %v666_v45, %v660_v42  ;;  %v1709_v42 = vld [vmem:[#allocation12 + $0x50] sm:$0xf]  ;;  %v1902_v45 = vld [vmem:[#allocation12 + $0x54] sm:$0xf0]  ;;  %v1682_v34 = vor.u32 %v1893_v25, %v1679_v33 }
  0xfc   :  { %v670_v48 = vpack.c.bf16 %v668_v47, %v668_v47  ;;  %1208 = vmatpush.bf16.msra.mxu0 %v1718_v29  ;;  %1234 = vmatpush.bf16.msra.mxu2 %v1722_v31  ;;  %v1901_v47 = vld [vmem:[#allocation12 + $0x54] sm:$0xf]  ;;  %v1894_v29 = vld [vmem:[#allocation12 + $0x14] sm:$0xf0] }
  0xfd   :  { %v1678_v31 = vor.u32 %v1894_v29, %v1677_v21 }
  0xfe   :  { %884 = vmatmul.bf16.vlgmr.msra.gmra.mxu1 %v670_v48  ;;  %910 = vmatmul.bf16.vlgmr.msra.gmra.mxu3 %v670_v48  ;;  %v1710_v48 = vor.u32 %v1902_v45, %v1709_v42  ;;  %v1751_v42 = vld [vmem:[#allocation12 + $0xa8] sm:$0xf0] }
  0xff   :  { %1220 = vmatpush.bf16.msra.mxu1 %v1790_v37  ;;  %1246 = vmatpush.bf16.msra.mxu3 %v1794_v41  ;;  %v1912_v37 = vld [vmem:[#allocation12 + $0xa4] sm:$0xf0]  ;;  %v1754_v45 = vor.u32 %v1911_v40, %v1751_v42 }
 0x100   :  { %1209 = vmatpush.bf16.msra.mxu0 %v1710_v48  ;;  %v1750_v41 = vor.u32 %v1912_v37, %v1749_v35  ;;  %v1892_v48 = vld [vmem:[#allocation12 + $0x4] sm:$0xf0] }
 0x174   :  { %v872_v49 = vpop.f32.mrf.mxu0 }
 0x175   :  { %v873_v51 = vadd.f32 %v872_v49, %v2336_v18  ;;  %v1711_v49 = vld [vmem:[#allocation12 + $0x58] sm:$0xf0] }
 0x17a   :  { %v898_v53 = vpop.f32.mrf.mxu2 }
 0x17b   :  { %v885_v54 = vpop.f32.mrf.mxu1  ;;  %v899_v63 = vadd.f32 %v898_v53, %v2353_v30  ;;  %v1781_v53 = vld [vmem:[#allocation12 + $0xe0] sm:$0xf] }
 0x17c   :  { %v886_v55 = vadd.f32 %v885_v54, %v873_v51  ;;  %v874_v58 = vpop.f32.mrf.mxu0  ;;  %v1714_v51 = vor.u32 %v1901_v47, %v1711_v49  ;;  %v1920_v54 = vld [vmem:[#allocation12 + $0xe4] sm:$0xf0]  ;;  %v1669_v47 = vld [vmem:[#allocation12] sm:$0xf]  ;;  %v1891_v49 = vld [vmem:[#allocation12 + $0x4] sm:$0xf] }
 0x17d   :  { %v1782_v58 = vor.u32 %v1920_v54, %v1781_v53  ;;  %v1671_v53 = vld [vmem:[#allocation12 + $0x8] sm:$0xf0] }
 0x17e   :  { %v917_v61 = vmul.f32 %v886_v55, %v886_v55  ;;  %v915_v17 = vmul.f32 %v886_v55, %v2369_v28  ;;  %1235 = vmatpush.bf16.msra.mxu2 %v1714_v51  ;;  %v1670_v51 = vor.u32 %v1892_v48, %v1669_v47  ;;  %v1674_v54 = vor.u32 %v1891_v49, %v1671_v53 }
 0x17f   :  { %1221 = vmatpush.bf16.msra.mxu1 %v1782_v58  ;;  %v1910_v58 = vld [vmem:[#allocation12 + $0x94] sm:$0xf0] }
 0x180   :  { %v919_v62 = vmul.f32 %v917_v61, %v2347_v38  ;;  %v1783_v61 = vld [vmem:[#allocation12 + $0xe8] sm:$0xf0] }
 0x181   :  { %v911_v1 = vpop.f32.mrf.mxu3 }
 0x182   :  { %v921_v2 = vmul.f32 1.442695, %v919_v62  ;;  %v912_v4 = vadd.f32 %v911_v1, %v899_v63  ;;  %v900_v5 = vpop.f32.mrf.mxu2  ;;  %v1701_v63 = vld [vmem:[#allocation12 + $0x40] sm:$0xf]  ;;  %v1900_v1 = vld [vmem:[#allocation12 + $0x44] sm:$0xf0] }
 0x183   :  { %v887_v6 = vpop.f32.mrf.mxu1  ;;  %v1703_v5 = vld [vmem:[#allocation12 + $0x48] sm:$0xf0] }
 0x184   :  { %1940 = vpow2.f32 %v921_v2  ;;  %v918_v7 = vmul.f32 %v912_v4, %v912_v4  ;;  %v916_v23 = vmul.f32 %v912_v4, %v2369_v28  ;;  %v1899_v2 = vld [vmem:[#allocation12 + $0x44] sm:$0xf] }
 0x185   :  { %v1706_v6 = vor.u32 %v1899_v2, %v1703_v5  ;;  %v1908_v5 = vld [vmem:[#allocation12 + $0x84] sm:$0xf0] }
 0x186   :  { %v920_v9 = vmul.f32 %v918_v7, %v2347_v38  ;;  %v1773_v7 = vld [vmem:[#allocation12 + $0xd0] sm:$0xf] }
 0x187   :  { %1236 = vmatpush.bf16.msra.mxu2 %v1706_v6  ;;  %v1907_v6 = vld [vmem:[#allocation12 + $0x84] sm:$0xf] }
 0x188   :  { %v923_v11 = vmul.f32 1.442695, %v920_v9  ;;  %v1918_v9 = vld [vmem:[#allocation12 + $0xd4] sm:$0xf0] }
 0x189   :  { %v913_v12 = vpop.f32.mrf.mxu3 }
 0x18a   :  { %v1941_v13 = vpop.eup %1940  ;;  %1942 = vpow2.f32 %v923_v11  ;;  %v1917_v11 = vld [vmem:[#allocation12 + $0xd4] sm:$0xf]  ;;  %v1774_v12 = vor.u32 %v1918_v9, %v1773_v7  ;;  %v1735_v9 = vld [vmem:[#allocation12 + $0x88] sm:$0xf0] }
 0x18b   :  { %v925_v15 = vmul.f32 %v1941_v13, %v886_v55  ;;  %v1919_v55 = vld [vmem:[#allocation12 + $0xe4] sm:$0xf] }
 0x18c   :  { %v1786_v62 = vor.u32 %v1919_v55, %v1783_v61  ;;  %1222 = vmatpush.bf16.msra.mxu1 %v1774_v12  ;;  %v1741_v55 = vld [vmem:[#allocation12 + $0x90] sm:$0xf]  ;;  %v1909_v61 = vld [vmem:[#allocation12 + $0x94] sm:$0xf] }
 0x18d   :  { %v927_v19 = vmul.f32 %v925_v15, %v2371_v3  ;;  %v931_v24 = vmul.f32 %v1941_v13, %v925_v15  ;;  %v1775_v13 = vld [vmem:[#allocation12 + $0xd8] sm:$0xf0] }
 0x18e   :  { %1247 = vmatpush.bf16.msra.mxu3 %v1786_v62  ;;  %v1778_v15 = vor.u32 %v1917_v11, %v1775_v13  ;;  %v1742_v62 = vor.u32 %v1910_v58, %v1741_v55  ;;  %v1738_v11 = vor.u32 %v1907_v6, %v1735_v9 }
 0x18f   :  { %v929_v20 = vadd.f32 %v927_v19, %v915_v17  ;;  %v933_v22 = vmul.f32 %v931_v24, %v2375_v10  ;;  %v1693_v17 = vld [vmem:[#allocation12 + $0x30] sm:$0xf]  ;;  %v1898_v19 = vld [vmem:[#allocation12 + $0x34] sm:$0xf0]  ;;  %v1897_v24 = vld [vmem:[#allocation12 + $0x34] sm:$0xf] }
 0x190   :  { %v1943_v26 = vpop.eup %1942 }
 0x191   :  { %v926_v43 = vmul.f32 %v1943_v26, %v912_v4  ;;  %v935_v32 = vadd.f32 %v933_v22, %v929_v20  ;;  %v1702_v4 = vor.u32 %v1900_v1, %v1701_v63  ;;  %v1694_v20 = vor.u32 %v1898_v19, %v1693_v17  ;;  %v1695_v22 = vld [vmem:[#allocation12 + $0x38] sm:$0xf0] }
 0x192   :  { %1248 = vmatpush.bf16.msra.mxu3 %v1778_v15  ;;  %v1743_v63 = vld [vmem:[#allocation12 + $0x98] sm:$0xf0] }
 0x193   :  { %v928_v36 = vmul.f32 %v926_v43, %v2371_v3  ;;  %v932_v39 = vmul.f32 %v1943_v26, %v926_v43  ;;  %v937_v27 = vpack.c.bf16 %v935_v32, %v935_v32  ;;  %1210 = vmatpush.bf16.msra.mxu0 %v1702_v4  ;;  %v1698_v26 = vor.u32 %v1897_v24, %v1695_v22  ;;  %v1765_v43 = vld [vmem:[#allocation12 + $0xc0] sm:$0xf]  ;;  %v1916_v32 = vld [vmem:[#allocation12 + $0xc4] sm:$0xf0] }
 0x194   :  { %v1746_v1 = vor.u32 %v1909_v61, %v1743_v63  ;;  %v1733_v4 = vld [vmem:[#allocation12 + $0x80] sm:$0xf] }
 0x195   :  { %v930_v44 = vadd.f32 %v928_v36, %v916_v23  ;;  %v934_v46 = vmul.f32 %v932_v39, %v2375_v10  ;;  %947 = vmatmul.bf16.vlgmr.msrb.gmra.mxu0 %v937_v27  ;;  %973 = vmatmul.bf16.vlgmr.msrb.gmra.mxu2 %v937_v27  ;;  %v1915_v23 = vld [vmem:[#allocation12 + $0xc4] sm:$0xf]  ;;  %v1766_v36 = vor.u32 %v1916_v32, %v1765_v43  ;;  %v1767_v39 = vld [vmem:[#allocation12 + $0xc8] sm:$0xf0] }
 0x196   :  { %1237 = vmatpush.bf16.msra.mxu2 %v1698_v26  ;;  %v1770_v27 = vor.u32 %v1915_v23, %v1767_v39  ;;  %v1734_v7 = vor.u32 %v1908_v5, %v1733_v4 }
 0x197   :  { %v936_v56 = vadd.f32 %v934_v46, %v930_v44  ;;  %1211 = vmatpush.bf16.msra.mxu0 %v1694_v20  ;;  %v1685_v44 = vld [vmem:[#allocation12 + $0x20] sm:$0xf]  ;;  %v1896_v46 = vld [vmem:[#allocation12 + $0x24] sm:$0xf0]  ;;  %1223 = vmatpush.bf16.msra.mxu1 %v1766_v36 }
 0x198   :  { %1249 = vmatpush.bf16.msra.mxu3 %v1770_v27 }
 0x199   :  { %v938_v50 = vpack.c.bf16 %v936_v56, %v936_v56  ;;  %v1895_v56 = vld [vmem:[#allocation12 + $0x24] sm:$0xf] }
 0x19a   :  { %v1690_v57 = vor.u32 %v1895_v56, %v1687_v52 }
 0x19b   :  { %960 = vmatmul.bf16.vlgmr.msrb.gmra.mxu1 %v938_v50  ;;  %986 = vmatmul.bf16.vlgmr.msrb.gmra.mxu3 %v938_v50  ;;  %v1686_v50 = vor.u32 %v1896_v46, %v1685_v44 }
 0x19c   :  { %1238 = vmatpush.bf16.msra.mxu2 %v1690_v57  ;;  %1224 = vmatpush.bf16.msra.mxu1 %v1758_v8 }
 0x19d   :  { %1212 = vmatpush.bf16.msra.mxu0 %v1686_v50  ;;  %1250 = vmatpush.bf16.msra.mxu3 %v1762_v16 }
 0x1a0   :  { %1239 = vmatpush.bf16.msra.mxu2 %v1682_v34  ;;  %1225 = vmatpush.bf16.msra.mxu1 %v1750_v41 }
 0x1a1   :  { %1213 = vmatpush.bf16.msra.mxu0 %v1678_v31  ;;  %1251 = vmatpush.bf16.msra.mxu3 %v1754_v45 }
 0x1a4   :  { %1240 = vmatpush.bf16.msra.mxu2 %v1674_v54  ;;  %1226 = vmatpush.bf16.msra.mxu1 %v1742_v62 }
 0x1a5   :  { %1214 = vmatpush.bf16.msra.mxu0 %v1670_v51  ;;  %1252 = vmatpush.bf16.msra.mxu3 %v1746_v1 }
 0x1a8   :  { %1227 = vmatpush.bf16.msra.mxu1 %v1734_v7 }
 0x1a9   :  { %1253 = vmatpush.bf16.msra.mxu3 %v1738_v11 }
 0x212   :  { %v948_v2 = vpop.f32.mrf.mxu0 }
 0x213   :  { %v949_v12 = vadd.f32 %v948_v2, %v2336_v18 }
 0x218   :  { %v961_v13 = vpop.f32.mrf.mxu1  ;;  %v974_v15 = vpop.f32.mrf.mxu2 }
 0x219   :  { %v962_v17 = vadd.f32 %v961_v13, %v949_v12  ;;  %v975_v22 = vadd.f32 %v974_v15, %v2353_v30 }
 0x21a   :  { %v950_v19 = vpop.f32.mrf.mxu0 }
 0x21b   :  { %v993_v24 = vmul.f32 %v962_v17, %v962_v17  ;;  %v991_v50 = vmul.f32 %v962_v17, %v2369_v28 }
 0x21d   :  { %v995_v20 = vmul.f32 %v993_v24, %v2347_v38 }
 0x21e   :  { %v987_v26 = vpop.f32.mrf.mxu3 }
 0x21f   :  { %v997_v43 = vmul.f32 1.442695, %v995_v20  ;;  %v988_v32 = vadd.f32 %v987_v26, %v975_v22 }
 0x220   :  { %v963_v23 = vpop.f32.mrf.mxu1  ;;  %v976_v36 = vpop.f32.mrf.mxu2 }
 0x221   :  { %1944 = vpow2.f32 %v997_v43  ;;  %v994_v39 = vmul.f32 %v988_v32, %v988_v32  ;;  %v992_v14 = vmul.f32 %v988_v32, %v2369_v28 }
 0x223   :  { %v996_v27 = vmul.f32 %v994_v39, %v2347_v38 }
 0x225   :  { %v999_v18 = vmul.f32 1.442695, %v996_v27 }
 0x226   :  { %v989_v44 = vpop.f32.mrf.mxu3 }
 0x227   :  { %v1945_v46 = vpop.eup %1944  ;;  %1946 = vpow2.f32 %v999_v18 }
 0x228   :  { %v1001_v56 = vmul.f32 %v1945_v46, %v962_v17 }
 0x22a   :  { %v1003_v52 = vmul.f32 %v1001_v56, %v2371_v3  ;;  %v1007_v57 = vmul.f32 %v1945_v46, %v1001_v56 }
 0x22c   :  { %v1005_v30 = vadd.f32 %v1003_v52, %v991_v50  ;;  %v1009_v59 = vmul.f32 %v1007_v57, %v2375_v10 }
 0x22d   :  { %v1947_v60 = vpop.eup %1946 }
 0x22e   :  { %v1002_v0 = vmul.f32 %v1947_v60, %v988_v32  ;;  %v1011_v8 = vadd.f32 %v1009_v59, %v1005_v30 }
 0x230   :  { %v1004_v38 = vmul.f32 %v1002_v0, %v2371_v3  ;;  %v1008_v16 = vmul.f32 %v1947_v60, %v1002_v0  ;;  %v1013_v21 = vpack.c.bf16 %v1011_v8, %v1011_v8 }
 0x232   :  { %v1006_v29 = vadd.f32 %v1004_v38, %v992_v14  ;;  %v1010_v25 = vmul.f32 %v1008_v16, %v2375_v10  ;;  %1215 = vmatmul.bf16.vlgmr.msra.gmra.mxu0 %v1013_v21  ;;  %1241 = vmatmul.bf16.vlgmr.msra.gmra.mxu2 %v1013_v21 }
 0x234   :  { %v1012_v31 = vadd.f32 %v1010_v25, %v1006_v29 }
 0x236   :  { %v1014_v33 = vpack.c.bf16 %v1012_v31, %v1012_v31 }
 0x238   :  { %1228 = vmatmul.bf16.vlgmr.msra.gmra.mxu1 %v1014_v33  ;;  %1254 = vmatmul.bf16.vlgmr.msra.gmra.mxu3 %v1014_v33 }
 0x2af   :  { %v1216_v34 = vpop.f32.mrf.mxu0 }
 0x2b5   :  { %v1229_v35 = vpop.f32.mrf.mxu1  ;;  %v1242_v37 = vpop.f32.mrf.mxu2 }
 0x2b6   :  { %v1230_v40 = vadd.f32 %v1229_v35, %v1216_v34 }
 0x2b7   :  { %v1218_v41 = vpop.f32.mrf.mxu0 }
 0x2b8   :  { %1259 = vst [vmem:[#allocation15] sm:$0xff] %v1230_v40 }
 0x2bb   :  { %v1255_v28 = vpop.f32.mrf.mxu3 }
 0x2bc   :  { %v1256_v3 = vadd.f32 %v1255_v28, %v1242_v37 }
 0x2bd   :  { %v1231_v10 = vpop.f32.mrf.mxu1  ;;  %v1244_v42 = vpop.f32.mrf.mxu2 }
 0x2be   :  { %1260 = vst [vmem:[#allocation15 + $0x8] sm:$0xff] %v1256_v3 }
 0x2bf   :  { %1271 = dma.vmem_to_hbm [thread:$0]  %s1267_s20, 256, %s1269_s23, [#allocation6]  }
 0x2c3   :  { %v1257_v45 = vpop.f32.mrf.mxu3 }
 0x2c4   :  { %2112 = dma.done.wait [#allocation6], 256  }
 0x2c5   :  { %2113 = vsyncadd [#allocation6], 4294967040 }
 0x2c6   :  { %1276 = vsyncpa [#allocation5], 1 }
 0x2c7   :  { %1277 = vsyncpa [#allocation10], 1 }
 0x2c8   :  { %1278 = vsyncpa [#allocation13], 1 }
 0x2c9   :  { %1279 = vsyncpa [#allocation6], 1 }
 0x2ca   :  { %1280 = vsyncpa [#allocation7], 1 }

</bundles_post_ra>
